<compile_context>
chip_gen: v6e
topology: v6e:2x2x1
jax: 0.10.0
libtpu: 0.0.40
codegen_flags: <defaults>
</compile_context>

<pallas_src>
import jax
import jax.numpy as jnp
from jax.experimental import pallas as pl
from jax.experimental.pallas import tpu as pltpu


# ----------------------------- config ---------------------------------------
B = 2           # batch
L = 8           # sequence length
VOCAB = 50
H = 32          # hidden size
N_HEADS = 2
D_HEAD = H // N_HEADS
INTER = 64      # FFN intermediate size
N_LAYERS = 2
MAX_POS = 16
LN_EPS = 1e-12
DTYPE = jnp.float32
# TODO(synk): at real BERT sizes (H=768, L=512) cast matmul operands to bf16
# (keep f32 accumulation / LN / softmax) and tile K/INTER; at toy size f32 fits.


# ----------------------------- fused encoder kernel -------------------------
def _layernorm(x, g, b):
    mu = jnp.mean(x, axis=-1, keepdims=True)
    xc = x - mu
    var = jnp.mean(xc * xc, axis=-1, keepdims=True)
    return xc * jax.lax.rsqrt(var + LN_EPS) * g + b


def _gelu(x):
    # tanh-approx GELU (EUP-friendly)
    return 0.5 * x * (1.0 + jnp.tanh(0.7978845608028654 * (x + 0.044715 * x * x * x)))


def _encoder_kernel(emb_ref, mask_ref,
                    emb_ln_g_ref, emb_ln_b_ref,
                    wqkv_ref, bqkv_ref, wo_ref, bo_ref,
                    ln1_g_ref, ln1_b_ref,
                    w1_ref, b1_ref, w2_ref, b2_ref,
                    ln2_g_ref, ln2_b_ref,
                    pooler_w_ref, pooler_b_ref,
                    out_ref):
    """One program = one sequence. emb:(1,L,H)  mask:(1,1,L)  out:(1,1,H)."""
    scale = 1.0 / float(D_HEAD) ** 0.5

    # embedding layernorm
    h = _layernorm(emb_ref[0], emb_ln_g_ref[...], emb_ln_b_ref[...])     # (L, H)

    # additive attention bias built in-kernel from the {0,1} mask (over keys)
    bias = (1.0 - mask_ref[0]) * -10000.0                                # (1, L)

    for l in range(N_LAYERS):                                            # static unroll
        # ---- attention: fused QKV projection, one (L,H)x(H,3H) MXU matmul
        qkv = jnp.dot(h, wqkv_ref[l],
                      preferred_element_type=jnp.float32) + bqkv_ref[l]  # (L, 3H)
        wo = wo_ref[l]                                                   # (H, H)
        attn = jnp.zeros((L, H), jnp.float32)
        for hd in range(N_HEADS):                                        # static unroll
            q = qkv[:, hd * D_HEAD:(hd + 1) * D_HEAD]                    # (L, dH)
            k = qkv[:, H + hd * D_HEAD:H + (hd + 1) * D_HEAD]            # (L, dH)
            v = qkv[:, 2 * H + hd * D_HEAD:2 * H + (hd + 1) * D_HEAD]    # (L, dH)
            s = jax.lax.dot_general(q, k, (((1,), (1,)), ((), ())),
                                    preferred_element_type=jnp.float32)  # (L, L)
            s = s * scale + bias
            s = s - jnp.max(s, axis=-1, keepdims=True)
            p = jnp.exp(s)
            p = p * pl.reciprocal(jnp.sum(p, axis=-1, keepdims=True), approx=True)
            ctx = jnp.dot(p, v, preferred_element_type=jnp.float32)      # (L, dH)
            # merge-heads folded into the output projection:
            # concat_h(ctx_h) @ Wo == sum_h ctx_h @ Wo[h*dH:(h+1)*dH, :]
            attn = attn + jnp.dot(ctx, wo[hd * D_HEAD:(hd + 1) * D_HEAD, :],
                                  preferred_element_type=jnp.float32)
        attn = attn + bo_ref[l]
        h = _layernorm(h + attn, ln1_g_ref[l], ln1_b_ref[l])

        # ---- FFN
        ffn = jnp.dot(h, w1_ref[l], preferred_element_type=jnp.float32) + b1_ref[l]
        ffn = _gelu(ffn)
        ffn = jnp.dot(ffn, w2_ref[l], preferred_element_type=jnp.float32) + b2_ref[l]
        h = _layernorm(h + ffn, ln2_g_ref[l], ln2_b_ref[l])

    # ---- pooler epilogue on the resident CLS row: tanh(dense(h[0]))
    cls = h[0:1, :]                                                      # (1, H)
    pooled = jnp.tanh(jnp.dot(cls, pooler_w_ref[...],
                              preferred_element_type=jnp.float32) + pooler_b_ref[...])
    out_ref[0] = pooled.astype(out_ref.dtype)


def encoder_pallas(emb, mask, p):
    """emb: (B, L, H); mask: (B, 1, L). Returns pooler output (B, H)."""
    def const_spec(arr):
        zeros = (0,) * arr.ndim
        return pl.BlockSpec(arr.shape, lambda b, z=zeros: z)

    weights = (
        p["emb_ln_g"], p["emb_ln_b"],
        p["wqkv"], p["bqkv"], p["wo"], p["bo"],
        p["ln1_g"], p["ln1_b"],
        p["w1"], p["b1"], p["w2"], p["b2"],
        p["ln2_g"], p["ln2_b"],
        p["pooler_w"], p["pooler_b"],
    )

    out = pl.pallas_call(
        _encoder_kernel,
        out_shape=jax.ShapeDtypeStruct((B, 1, H), DTYPE),
        grid=(B,),
        in_specs=[
            pl.BlockSpec((1, L, H), lambda b: (b, 0, 0)),   # embeddings
            pl.BlockSpec((1, 1, L), lambda b: (b, 0, 0)),   # attention mask
        ] + [const_spec(w) for w in weights],
        out_specs=pl.BlockSpec((1, 1, H), lambda b: (b, 0, 0)),
        compiler_params=pltpu.CompilerParams(
            dimension_semantics=("parallel",)),             # shards batch on v7x 2-TC
    )(emb, mask, *weights)
    return out[:, 0, :]


# ----------------------------- parameters -----------------------------------
def init_params(key):
    def nrm(k, shape):
        return (0.02 * jax.random.normal(k, shape)).astype(DTYPE)

    keys = iter(jax.random.split(key, 4 + N_LAYERS * 6))
    params = {
        "word_emb": nrm(next(keys), (VOCAB, H)),
        "pos_emb": nrm(next(keys), (MAX_POS, H)),
        "type_emb": nrm(next(keys), (2, H)),
        "emb_ln_g": jnp.ones((1, H), DTYPE),
        "emb_ln_b": jnp.zeros((1, H), DTYPE),
        "pooler_w": nrm(next(keys), (H, H)),
        "pooler_b": jnp.zeros((1, H), DTYPE),
    }
    wqkv, wo, w1, w2 = [], [], [], []
    for _ in range(N_LAYERS):
        wq = nrm(next(keys), (H, H))
        wk = nrm(next(keys), (H, H))
        wv = nrm(next(keys), (H, H))
        wqkv.append(jnp.concatenate([wq, wk, wv], axis=1))   # fused (H, 3H)
        wo.append(nrm(next(keys), (H, H)))
        w1.append(nrm(next(keys), (H, INTER)))
        w2.append(nrm(next(keys), (INTER, H)))
    params.update({
        "wqkv": jnp.stack(wqkv), "bqkv": jnp.zeros((N_LAYERS, 1, 3 * H), DTYPE),
        "wo": jnp.stack(wo),     "bo":   jnp.zeros((N_LAYERS, 1, H), DTYPE),
        "ln1_g": jnp.ones((N_LAYERS, 1, H), DTYPE),
        "ln1_b": jnp.zeros((N_LAYERS, 1, H), DTYPE),
        "w1": jnp.stack(w1), "b1": jnp.zeros((N_LAYERS, 1, INTER), DTYPE),
        "w2": jnp.stack(w2), "b2": jnp.zeros((N_LAYERS, 1, H), DTYPE),
        "ln2_g": jnp.ones((N_LAYERS, 1, H), DTYPE),
        "ln2_b": jnp.zeros((N_LAYERS, 1, H), DTYPE),
    })
    return params


# ----------------------------- forward pass ----------------------------------
def bert_encoder_forward(params, seqs, att_mask):
    """seqs: (B, L) int32 token ids; att_mask: (B, L) {0,1}. Returns (B, H)."""
    # embedding lookups are glue (gather); everything else is one Pallas kernel
    tok = jnp.take(params["word_emb"], seqs, axis=0)                 # (B, L, H)
    pos = params["pos_emb"][:L][None, :, :]                          # (1, L, H)
    typ = params["type_emb"][0][None, None, :]                       # token type 0
    emb = (tok + pos + typ).astype(DTYPE)                            # (B, L, H)
    mask = att_mask.astype(DTYPE).reshape(B, 1, L)                   # (B, 1, L)
    return encoder_pallas(emb, mask, params)


# ----------------------------- main ------------------------------------------
if __name__ == "__main__":
    key = jax.random.PRNGKey(0)
    k_param, k_tok = jax.random.split(key)

    params = init_params(k_param)

    seqs = jax.random.randint(k_tok, (B, L), 0, VOCAB, dtype=jnp.int32)
    # batch 0: full length; batch 1: last 3 positions are padding
    att_mask = jnp.array([[1] * L, [1] * (L - 3) + [0] * 3], dtype=jnp.int32)

    out = jax.jit(bert_encoder_forward)(params, seqs, att_mask)
    out = jax.block_until_ready(out)
    assert out.shape == (B, H) and out.dtype == DTYPE
    print("KERNEL_OK")
</pallas_src>

<mosaic_0001>
module attributes {stable_mosaic.version = 11 : i64} {
  func.func @_encoder_kernel(%arg0: i32, %arg1: memref<1x8x32xf32, #tpu.memory_space<vmem>>, %arg2: memref<1x1x8xf32, #tpu.memory_space<vmem>>, %arg3: memref<1x32xf32, #tpu.memory_space<vmem>>, %arg4: memref<1x32xf32, #tpu.memory_space<vmem>>, %arg5: memref<2x32x96xf32, #tpu.memory_space<vmem>>, %arg6: memref<2x1x96xf32, #tpu.memory_space<vmem>>, %arg7: memref<2x32x32xf32, #tpu.memory_space<vmem>>, %arg8: memref<2x1x32xf32, #tpu.memory_space<vmem>>, %arg9: memref<2x1x32xf32, #tpu.memory_space<vmem>>, %arg10: memref<2x1x32xf32, #tpu.memory_space<vmem>>, %arg11: memref<2x32x64xf32, #tpu.memory_space<vmem>>, %arg12: memref<2x1x64xf32, #tpu.memory_space<vmem>>, %arg13: memref<2x64x32xf32, #tpu.memory_space<vmem>>, %arg14: memref<2x1x32xf32, #tpu.memory_space<vmem>>, %arg15: memref<2x1x32xf32, #tpu.memory_space<vmem>>, %arg16: memref<2x1x32xf32, #tpu.memory_space<vmem>>, %arg17: memref<32x32xf32, #tpu.memory_space<vmem>>, %arg18: memref<1x32xf32, #tpu.memory_space<vmem>>, %arg19: memref<1x1x32xf32, #tpu.memory_space<vmem>>) attributes {dimension_semantics = [#tpu.dimension_semantics<parallel>], iteration_bounds = array<i64: 2>, scalar_prefetch = 0 : i64, scratch_operands = 0 : i64, tpu.core_type = #tpu.core_type<tc>, window_params = [{transform_indices = @transform_0, window_bounds = array<i64: 1, 8, 32>}, {transform_indices = @transform_1, window_bounds = array<i64: 1, 1, 8>}, {pipeline_mode = #tpu.pipeline_mode<synchronous>, transform_indices = @transform_2, window_bounds = array<i64: 1, 32>}, {pipeline_mode = #tpu.pipeline_mode<synchronous>, transform_indices = @transform_3, window_bounds = array<i64: 1, 32>}, {pipeline_mode = #tpu.pipeline_mode<synchronous>, transform_indices = @transform_4, window_bounds = array<i64: 2, 32, 96>}, {pipeline_mode = #tpu.pipeline_mode<synchronous>, transform_indices = @transform_5, window_bounds = array<i64: 2, 1, 96>}, {pipeline_mode = #tpu.pipeline_mode<synchronous>, transform_indices = @transform_6, window_bounds = array<i64: 2, 32, 32>}, {pipeline_mode = #tpu.pipeline_mode<synchronous>, transform_indices = @transform_7, window_bounds = array<i64: 2, 1, 32>}, {pipeline_mode = #tpu.pipeline_mode<synchronous>, transform_indices = @transform_8, window_bounds = array<i64: 2, 1, 32>}, {pipeline_mode = #tpu.pipeline_mode<synchronous>, transform_indices = @transform_9, window_bounds = array<i64: 2, 1, 32>}, {pipeline_mode = #tpu.pipeline_mode<synchronous>, transform_indices = @transform_10, window_bounds = array<i64: 2, 32, 64>}, {pipeline_mode = #tpu.pipeline_mode<synchronous>, transform_indices = @transform_11, window_bounds = array<i64: 2, 1, 64>}, {pipeline_mode = #tpu.pipeline_mode<synchronous>, transform_indices = @transform_12, window_bounds = array<i64: 2, 64, 32>}, {pipeline_mode = #tpu.pipeline_mode<synchronous>, transform_indices = @transform_13, window_bounds = array<i64: 2, 1, 32>}, {pipeline_mode = #tpu.pipeline_mode<synchronous>, transform_indices = @transform_14, window_bounds = array<i64: 2, 1, 32>}, {pipeline_mode = #tpu.pipeline_mode<synchronous>, transform_indices = @transform_15, window_bounds = array<i64: 2, 1, 32>}, {pipeline_mode = #tpu.pipeline_mode<synchronous>, transform_indices = @transform_16, window_bounds = array<i64: 32, 32>}, {pipeline_mode = #tpu.pipeline_mode<synchronous>, transform_indices = @transform_17, window_bounds = array<i64: 1, 32>}, {transform_indices = @transform_18, window_bounds = array<i64: 1, 1, 32>}]} {
    %c0 = arith.constant 0 : index
    %c0_0 = arith.constant 0 : index
    %c0_1 = arith.constant 0 : index
    %0 = vector.load %arg1[%c0, %c0_0, %c0_1] : memref<1x8x32xf32, #tpu.memory_space<vmem>>, vector<1x8x32xf32>
    %1 = vector.shape_cast %0 : vector<1x8x32xf32> to vector<8x32xf32>
    %c0_2 = arith.constant 0 : index
    %c0_3 = arith.constant 0 : index
    %2 = vector.load %arg3[%c0_2, %c0_3] : memref<1x32xf32, #tpu.memory_space<vmem>>, vector<1x32xf32>
    %c0_4 = arith.constant 0 : index
    %c0_5 = arith.constant 0 : index
    %3 = vector.load %arg4[%c0_4, %c0_5] : memref<1x32xf32, #tpu.memory_space<vmem>>, vector<1x32xf32>
    %cst = arith.constant dense<0.000000e+00> : vector<8xf32>
    %4 = vector.multi_reduction <add>, %1, %cst [1] : vector<8x32xf32> to vector<8xf32>
    %5 = vector.shape_cast %4 : vector<8xf32> to vector<8x1xf32>
    %cst_6 = arith.constant 3.200000e+01 : f32
    %6 = vector.broadcast %cst_6 : f32 to vector<8x1xf32>
    %7 = arith.divf %5, %6 : vector<8x1xf32>
    %8 = vector.broadcast %7 : vector<8x1xf32> to vector<8x32xf32>
    %9 = arith.subf %1, %8 : vector<8x32xf32>
    %10 = arith.mulf %9, %9 : vector<8x32xf32>
    %cst_7 = arith.constant dense<0.000000e+00> : vector<8xf32>
    %11 = vector.multi_reduction <add>, %10, %cst_7 [1] : vector<8x32xf32> to vector<8xf32>
    %12 = vector.shape_cast %11 : vector<8xf32> to vector<8x1xf32>
    %cst_8 = arith.constant 3.200000e+01 : f32
    %13 = vector.broadcast %cst_8 : f32 to vector<8x1xf32>
    %14 = arith.divf %12, %13 : vector<8x1xf32>
    %cst_9 = arith.constant 9.99999996E-13 : f32
    %15 = vector.broadcast %cst_9 : f32 to vector<8x1xf32>
    %16 = arith.addf %14, %15 : vector<8x1xf32>
    %17 = math.rsqrt %16 : vector<8x1xf32>
    %18 = vector.broadcast %17 : vector<8x1xf32> to vector<8x32xf32>
    %19 = arith.mulf %9, %18 : vector<8x32xf32>
    %20 = vector.broadcast %2 : vector<1x32xf32> to vector<8x32xf32>
    %21 = arith.mulf %19, %20 : vector<8x32xf32>
    %22 = vector.broadcast %3 : vector<1x32xf32> to vector<8x32xf32>
    %23 = arith.addf %21, %22 : vector<8x32xf32>
    %c0_10 = arith.constant 0 : index
    %c0_11 = arith.constant 0 : index
    %c0_12 = arith.constant 0 : index
    %24 = vector.load %arg2[%c0_10, %c0_11, %c0_12] : memref<1x1x8xf32, #tpu.memory_space<vmem>>, vector<1x1x8xf32>
    %25 = vector.shape_cast %24 : vector<1x1x8xf32> to vector<1x8xf32>
    %cst_13 = arith.constant 1.000000e+00 : f32
    %26 = vector.broadcast %cst_13 : f32 to vector<1x8xf32>
    %27 = arith.subf %26, %25 : vector<1x8xf32>
    %cst_14 = arith.constant -1.000000e+04 : f32
    %28 = vector.broadcast %cst_14 : f32 to vector<1x8xf32>
    %29 = arith.mulf %27, %28 : vector<1x8xf32>
    %c0_15 = arith.constant 0 : index
    %c0_16 = arith.constant 0 : index
    %c0_17 = arith.constant 0 : index
    %30 = vector.load %arg5[%c0_15, %c0_16, %c0_17] : memref<2x32x96xf32, #tpu.memory_space<vmem>>, vector<1x32x96xf32>
    %31 = vector.shape_cast %30 : vector<1x32x96xf32> to vector<32x96xf32>
    %cst_18 = arith.constant dense<0.000000e+00> : vector<8x96xf32>
    %32 = tpu.matmul %23, %31, %cst_18 {dimension_numbers = #tpu.dot_dimension_numbers<[1], [0], [0], [1], [0, 0, 1, 1], [], []>} : vector<8x32xf32>, vector<32x96xf32>, vector<8x96xf32> -> vector<8x96xf32>
    %c0_19 = arith.constant 0 : index
    %c0_20 = arith.constant 0 : index
    %c0_21 = arith.constant 0 : index
    %33 = vector.load %arg6[%c0_19, %c0_20, %c0_21] : memref<2x1x96xf32, #tpu.memory_space<vmem>>, vector<1x1x96xf32>
    %34 = vector.shape_cast %33 : vector<1x1x96xf32> to vector<1x96xf32>
    %35 = vector.broadcast %34 : vector<1x96xf32> to vector<8x96xf32>
    %36 = arith.addf %32, %35 : vector<8x96xf32>
    %c0_22 = arith.constant 0 : index
    %c0_23 = arith.constant 0 : index
    %c0_24 = arith.constant 0 : index
    %37 = vector.load %arg7[%c0_22, %c0_23, %c0_24] : memref<2x32x32xf32, #tpu.memory_space<vmem>>, vector<1x32x32xf32>
    %38 = vector.shape_cast %37 : vector<1x32x32xf32> to vector<32x32xf32>
    %cst_25 = arith.constant 0.000000e+00 : f32
    %39 = vector.broadcast %cst_25 : f32 to vector<8x32xf32>
    %40 = vector.extract_strided_slice %36 {offsets = [0, 0], sizes = [8, 16], strides = [1, 1]} : vector<8x96xf32> to vector<8x16xf32>
    %41 = vector.extract_strided_slice %36 {offsets = [0, 32], sizes = [8, 16], strides = [1, 1]} : vector<8x96xf32> to vector<8x16xf32>
    %42 = vector.extract_strided_slice %36 {offsets = [0, 64], sizes = [8, 16], strides = [1, 1]} : vector<8x96xf32> to vector<8x16xf32>
    %cst_26 = arith.constant dense<0.000000e+00> : vector<8x8xf32>
    %43 = tpu.matmul %40, %41, %cst_26 {dimension_numbers = #tpu.dot_dimension_numbers<[1], [1], [0], [0], [0, 0, 1, 0], [], []>} : vector<8x16xf32>, vector<8x16xf32>, vector<8x8xf32> -> vector<8x8xf32>
    %cst_27 = arith.constant 2.500000e-01 : f32
    %44 = vector.broadcast %cst_27 : f32 to vector<8x8xf32>
    %45 = arith.mulf %43, %44 : vector<8x8xf32>
    %46 = vector.broadcast %29 : vector<1x8xf32> to vector<8x8xf32>
    %47 = arith.addf %45, %46 : vector<8x8xf32>
    %cst_28 = arith.constant dense<0xFF800000> : vector<8xf32>
    %48 = vector.multi_reduction <maximumf>, %47, %cst_28 [1] : vector<8x8xf32> to vector<8xf32>
    %49 = vector.shape_cast %48 : vector<8xf32> to vector<8x1xf32>
    %50 = vector.broadcast %49 : vector<8x1xf32> to vector<8x8xf32>
    %51 = arith.subf %47, %50 : vector<8x8xf32>
    %52 = math.exp %51 : vector<8x8xf32>
    %cst_29 = arith.constant dense<0.000000e+00> : vector<8xf32>
    %53 = vector.multi_reduction <add>, %52, %cst_29 [1] : vector<8x8xf32> to vector<8xf32>
    %54 = vector.shape_cast %53 : vector<8xf32> to vector<8x1xf32>
    %55 = tpu.reciprocal %54 {approx = true} : vector<8x1xf32> -> vector<8x1xf32>
    %56 = vector.broadcast %55 : vector<8x1xf32> to vector<8x8xf32>
    %57 = arith.mulf %52, %56 : vector<8x8xf32>
    %cst_30 = arith.constant dense<0.000000e+00> : vector<8x16xf32>
    %58 = tpu.matmul %57, %42, %cst_30 {dimension_numbers = #tpu.dot_dimension_numbers<[1], [0], [0], [1], [0, 0, 1, 1], [], []>} : vector<8x8xf32>, vector<8x16xf32>, vector<8x16xf32> -> vector<8x16xf32>
    %59 = vector.extract_strided_slice %38 {offsets = [0, 0], sizes = [16, 32], strides = [1, 1]} : vector<32x32xf32> to vector<16x32xf32>
    %cst_31 = arith.constant dense<0.000000e+00> : vector<8x32xf32>
    %60 = tpu.matmul %58, %59, %cst_31 {dimension_numbers = #tpu.dot_dimension_numbers<[1], [0], [0], [1], [0, 0, 1, 1], [], []>} : vector<8x16xf32>, vector<16x32xf32>, vector<8x32xf32> -> vector<8x32xf32>
    %61 = arith.addf %39, %60 : vector<8x32xf32>
    %62 = vector.extract_strided_slice %36 {offsets = [0, 16], sizes = [8, 16], strides = [1, 1]} : vector<8x96xf32> to vector<8x16xf32>
    %63 = vector.extract_strided_slice %36 {offsets = [0, 48], sizes = [8, 16], strides = [1, 1]} : vector<8x96xf32> to vector<8x16xf32>
    %64 = vector.extract_strided_slice %36 {offsets = [0, 80], sizes = [8, 16], strides = [1, 1]} : vector<8x96xf32> to vector<8x16xf32>
    %cst_32 = arith.constant dense<0.000000e+00> : vector<8x8xf32>
    %65 = tpu.matmul %62, %63, %cst_32 {dimension_numbers = #tpu.dot_dimension_numbers<[1], [1], [0], [0], [0, 0, 1, 0], [], []>} : vector<8x16xf32>, vector<8x16xf32>, vector<8x8xf32> -> vector<8x8xf32>
    %cst_33 = arith.constant 2.500000e-01 : f32
    %66 = vector.broadcast %cst_33 : f32 to vector<8x8xf32>
    %67 = arith.mulf %65, %66 : vector<8x8xf32>
    %68 = vector.broadcast %29 : vector<1x8xf32> to vector<8x8xf32>
    %69 = arith.addf %67, %68 : vector<8x8xf32>
    %cst_34 = arith.constant dense<0xFF800000> : vector<8xf32>
    %70 = vector.multi_reduction <maximumf>, %69, %cst_34 [1] : vector<8x8xf32> to vector<8xf32>
    %71 = vector.shape_cast %70 : vector<8xf32> to vector<8x1xf32>
    %72 = vector.broadcast %71 : vector<8x1xf32> to vector<8x8xf32>
    %73 = arith.subf %69, %72 : vector<8x8xf32>
    %74 = math.exp %73 : vector<8x8xf32>
    %cst_35 = arith.constant dense<0.000000e+00> : vector<8xf32>
    %75 = vector.multi_reduction <add>, %74, %cst_35 [1] : vector<8x8xf32> to vector<8xf32>
    %76 = vector.shape_cast %75 : vector<8xf32> to vector<8x1xf32>
    %77 = tpu.reciprocal %76 {approx = true} : vector<8x1xf32> -> vector<8x1xf32>
    %78 = vector.broadcast %77 : vector<8x1xf32> to vector<8x8xf32>
    %79 = arith.mulf %74, %78 : vector<8x8xf32>
    %cst_36 = arith.constant dense<0.000000e+00> : vector<8x16xf32>
    %80 = tpu.matmul %79, %64, %cst_36 {dimension_numbers = #tpu.dot_dimension_numbers<[1], [0], [0], [1], [0, 0, 1, 1], [], []>} : vector<8x8xf32>, vector<8x16xf32>, vector<8x16xf32> -> vector<8x16xf32>
    %81 = vector.extract_strided_slice %38 {offsets = [16, 0], sizes = [16, 32], strides = [1, 1]} : vector<32x32xf32> to vector<16x32xf32>
    %cst_37 = arith.constant dense<0.000000e+00> : vector<8x32xf32>
    %82 = tpu.matmul %80, %81, %cst_37 {dimension_numbers = #tpu.dot_dimension_numbers<[1], [0], [0], [1], [0, 0, 1, 1], [], []>} : vector<8x16xf32>, vector<16x32xf32>, vector<8x32xf32> -> vector<8x32xf32>
    %83 = arith.addf %61, %82 : vector<8x32xf32>
    %c0_38 = arith.constant 0 : index
    %c0_39 = arith.constant 0 : index
    %c0_40 = arith.constant 0 : index
    %84 = vector.load %arg8[%c0_38, %c0_39, %c0_40] : memref<2x1x32xf32, #tpu.memory_space<vmem>>, vector<1x1x32xf32>
    %85 = vector.shape_cast %84 : vector<1x1x32xf32> to vector<1x32xf32>
    %86 = vector.broadcast %85 : vector<1x32xf32> to vector<8x32xf32>
    %87 = arith.addf %83, %86 : vector<8x32xf32>
    %88 = arith.addf %23, %87 : vector<8x32xf32>
    %c0_41 = arith.constant 0 : index
    %c0_42 = arith.constant 0 : index
    %c0_43 = arith.constant 0 : index
    %89 = vector.load %arg9[%c0_41, %c0_42, %c0_43] : memref<2x1x32xf32, #tpu.memory_space<vmem>>, vector<1x1x32xf32>
    %90 = vector.shape_cast %89 : vector<1x1x32xf32> to vector<1x32xf32>
    %c0_44 = arith.constant 0 : index
    %c0_45 = arith.constant 0 : index
    %c0_46 = arith.constant 0 : index
    %91 = vector.load %arg10[%c0_44, %c0_45, %c0_46] : memref<2x1x32xf32, #tpu.memory_space<vmem>>, vector<1x1x32xf32>
    %92 = vector.shape_cast %91 : vector<1x1x32xf32> to vector<1x32xf32>
    %cst_47 = arith.constant dense<0.000000e+00> : vector<8xf32>
    %93 = vector.multi_reduction <add>, %88, %cst_47 [1] : vector<8x32xf32> to vector<8xf32>
    %94 = vector.shape_cast %93 : vector<8xf32> to vector<8x1xf32>
    %cst_48 = arith.constant 3.200000e+01 : f32
    %95 = vector.broadcast %cst_48 : f32 to vector<8x1xf32>
    %96 = arith.divf %94, %95 : vector<8x1xf32>
    %97 = vector.broadcast %96 : vector<8x1xf32> to vector<8x32xf32>
    %98 = arith.subf %88, %97 : vector<8x32xf32>
    %99 = arith.mulf %98, %98 : vector<8x32xf32>
    %cst_49 = arith.constant dense<0.000000e+00> : vector<8xf32>
    %100 = vector.multi_reduction <add>, %99, %cst_49 [1] : vector<8x32xf32> to vector<8xf32>
    %101 = vector.shape_cast %100 : vector<8xf32> to vector<8x1xf32>
    %cst_50 = arith.constant 3.200000e+01 : f32
    %102 = vector.broadcast %cst_50 : f32 to vector<8x1xf32>
    %103 = arith.divf %101, %102 : vector<8x1xf32>
    %cst_51 = arith.constant 9.99999996E-13 : f32
    %104 = vector.broadcast %cst_51 : f32 to vector<8x1xf32>
    %105 = arith.addf %103, %104 : vector<8x1xf32>
    %106 = math.rsqrt %105 : vector<8x1xf32>
    %107 = vector.broadcast %106 : vector<8x1xf32> to vector<8x32xf32>
    %108 = arith.mulf %98, %107 : vector<8x32xf32>
    %109 = vector.broadcast %90 : vector<1x32xf32> to vector<8x32xf32>
    %110 = arith.mulf %108, %109 : vector<8x32xf32>
    %111 = vector.broadcast %92 : vector<1x32xf32> to vector<8x32xf32>
    %112 = arith.addf %110, %111 : vector<8x32xf32>
    %c0_52 = arith.constant 0 : index
    %c0_53 = arith.constant 0 : index
    %c0_54 = arith.constant 0 : index
    %113 = vector.load %arg11[%c0_52, %c0_53, %c0_54] : memref<2x32x64xf32, #tpu.memory_space<vmem>>, vector<1x32x64xf32>
    %114 = vector.shape_cast %113 : vector<1x32x64xf32> to vector<32x64xf32>
    %cst_55 = arith.constant dense<0.000000e+00> : vector<8x64xf32>
    %115 = tpu.matmul %112, %114, %cst_55 {dimension_numbers = #tpu.dot_dimension_numbers<[1], [0], [0], [1], [0, 0, 1, 1], [], []>} : vector<8x32xf32>, vector<32x64xf32>, vector<8x64xf32> -> vector<8x64xf32>
    %c0_56 = arith.constant 0 : index
    %c0_57 = arith.constant 0 : index
    %c0_58 = arith.constant 0 : index
    %116 = vector.load %arg12[%c0_56, %c0_57, %c0_58] : memref<2x1x64xf32, #tpu.memory_space<vmem>>, vector<1x1x64xf32>
    %117 = vector.shape_cast %116 : vector<1x1x64xf32> to vector<1x64xf32>
    %118 = vector.broadcast %117 : vector<1x64xf32> to vector<8x64xf32>
    %119 = arith.addf %115, %118 : vector<8x64xf32>
    %cst_59 = arith.constant 5.000000e-01 : f32
    %120 = vector.broadcast %cst_59 : f32 to vector<8x64xf32>
    %121 = arith.mulf %120, %119 : vector<8x64xf32>
    %cst_60 = arith.constant 4.471500e-02 : f32
    %122 = vector.broadcast %cst_60 : f32 to vector<8x64xf32>
    %123 = arith.mulf %122, %119 : vector<8x64xf32>
    %124 = arith.mulf %123, %119 : vector<8x64xf32>
    %125 = arith.mulf %124, %119 : vector<8x64xf32>
    %126 = arith.addf %119, %125 : vector<8x64xf32>
    %cst_61 = arith.constant 0.797884583 : f32
    %127 = vector.broadcast %cst_61 : f32 to vector<8x64xf32>
    %128 = arith.mulf %127, %126 : vector<8x64xf32>
    %129 = math.tanh %128 : vector<8x64xf32>
    %cst_62 = arith.constant 1.000000e+00 : f32
    %130 = vector.broadcast %cst_62 : f32 to vector<8x64xf32>
    %131 = arith.addf %130, %129 : vector<8x64xf32>
    %132 = arith.mulf %121, %131 : vector<8x64xf32>
    %c0_63 = arith.constant 0 : index
    %c0_64 = arith.constant 0 : index
    %c0_65 = arith.constant 0 : index
    %133 = vector.load %arg13[%c0_63, %c0_64, %c0_65] : memref<2x64x32xf32, #tpu.memory_space<vmem>>, vector<1x64x32xf32>
    %134 = vector.shape_cast %133 : vector<1x64x32xf32> to vector<64x32xf32>
    %cst_66 = arith.constant dense<0.000000e+00> : vector<8x32xf32>
    %135 = tpu.matmul %132, %134, %cst_66 {dimension_numbers = #tpu.dot_dimension_numbers<[1], [0], [0], [1], [0, 0, 1, 1], [], []>} : vector<8x64xf32>, vector<64x32xf32>, vector<8x32xf32> -> vector<8x32xf32>
    %c0_67 = arith.constant 0 : index
    %c0_68 = arith.constant 0 : index
    %c0_69 = arith.constant 0 : index
    %136 = vector.load %arg14[%c0_67, %c0_68, %c0_69] : memref<2x1x32xf32, #tpu.memory_space<vmem>>, vector<1x1x32xf32>
    %137 = vector.shape_cast %136 : vector<1x1x32xf32> to vector<1x32xf32>
    %138 = vector.broadcast %137 : vector<1x32xf32> to vector<8x32xf32>
    %139 = arith.addf %135, %138 : vector<8x32xf32>
    %140 = arith.addf %112, %139 : vector<8x32xf32>
    %c0_70 = arith.constant 0 : index
    %c0_71 = arith.constant 0 : index
    %c0_72 = arith.constant 0 : index
    %141 = vector.load %arg15[%c0_70, %c0_71, %c0_72] : memref<2x1x32xf32, #tpu.memory_space<vmem>>, vector<1x1x32xf32>
    %142 = vector.shape_cast %141 : vector<1x1x32xf32> to vector<1x32xf32>
    %c0_73 = arith.constant 0 : index
    %c0_74 = arith.constant 0 : index
    %c0_75 = arith.constant 0 : index
    %143 = vector.load %arg16[%c0_73, %c0_74, %c0_75] : memref<2x1x32xf32, #tpu.memory_space<vmem>>, vector<1x1x32xf32>
    %144 = vector.shape_cast %143 : vector<1x1x32xf32> to vector<1x32xf32>
    %cst_76 = arith.constant dense<0.000000e+00> : vector<8xf32>
    %145 = vector.multi_reduction <add>, %140, %cst_76 [1] : vector<8x32xf32> to vector<8xf32>
    %146 = vector.shape_cast %145 : vector<8xf32> to vector<8x1xf32>
    %cst_77 = arith.constant 3.200000e+01 : f32
    %147 = vector.broadcast %cst_77 : f32 to vector<8x1xf32>
    %148 = arith.divf %146, %147 : vector<8x1xf32>
    %149 = vector.broadcast %148 : vector<8x1xf32> to vector<8x32xf32>
    %150 = arith.subf %140, %149 : vector<8x32xf32>
    %151 = arith.mulf %150, %150 : vector<8x32xf32>
    %cst_78 = arith.constant dense<0.000000e+00> : vector<8xf32>
    %152 = vector.multi_reduction <add>, %151, %cst_78 [1] : vector<8x32xf32> to vector<8xf32>
    %153 = vector.shape_cast %152 : vector<8xf32> to vector<8x1xf32>
    %cst_79 = arith.constant 3.200000e+01 : f32
    %154 = vector.broadcast %cst_79 : f32 to vector<8x1xf32>
    %155 = arith.divf %153, %154 : vector<8x1xf32>
    %cst_80 = arith.constant 9.99999996E-13 : f32
    %156 = vector.broadcast %cst_80 : f32 to vector<8x1xf32>
    %157 = arith.addf %155, %156 : vector<8x1xf32>
    %158 = math.rsqrt %157 : vector<8x1xf32>
    %159 = vector.broadcast %158 : vector<8x1xf32> to vector<8x32xf32>
    %160 = arith.mulf %150, %159 : vector<8x32xf32>
    %161 = vector.broadcast %142 : vector<1x32xf32> to vector<8x32xf32>
    %162 = arith.mulf %160, %161 : vector<8x32xf32>
    %163 = vector.broadcast %144 : vector<1x32xf32> to vector<8x32xf32>
    %164 = arith.addf %162, %163 : vector<8x32xf32>
    %c1 = arith.constant 1 : index
    %c0_81 = arith.constant 0 : index
    %c0_82 = arith.constant 0 : index
    %165 = vector.load %arg5[%c1, %c0_81, %c0_82] : memref<2x32x96xf32, #tpu.memory_space<vmem>>, vector<1x32x96xf32>
    %166 = vector.shape_cast %165 : vector<1x32x96xf32> to vector<32x96xf32>
    %cst_83 = arith.constant dense<0.000000e+00> : vector<8x96xf32>
    %167 = tpu.matmul %164, %166, %cst_83 {dimension_numbers = #tpu.dot_dimension_numbers<[1], [0], [0], [1], [0, 0, 1, 1], [], []>} : vector<8x32xf32>, vector<32x96xf32>, vector<8x96xf32> -> vector<8x96xf32>
    %c1_84 = arith.constant 1 : index
    %c0_85 = arith.constant 0 : index
    %c0_86 = arith.constant 0 : index
    %168 = vector.load %arg6[%c1_84, %c0_85, %c0_86] : memref<2x1x96xf32, #tpu.memory_space<vmem>>, vector<1x1x96xf32>
    %169 = vector.shape_cast %168 : vector<1x1x96xf32> to vector<1x96xf32>
    %170 = vector.broadcast %169 : vector<1x96xf32> to vector<8x96xf32>
    %171 = arith.addf %167, %170 : vector<8x96xf32>
    %c1_87 = arith.constant 1 : index
    %c0_88 = arith.constant 0 : index
    %c0_89 = arith.constant 0 : index
    %172 = vector.load %arg7[%c1_87, %c0_88, %c0_89] : memref<2x32x32xf32, #tpu.memory_space<vmem>>, vector<1x32x32xf32>
    %173 = vector.shape_cast %172 : vector<1x32x32xf32> to vector<32x32xf32>
    %cst_90 = arith.constant 0.000000e+00 : f32
    %174 = vector.broadcast %cst_90 : f32 to vector<8x32xf32>
    %175 = vector.extract_strided_slice %171 {offsets = [0, 0], sizes = [8, 16], strides = [1, 1]} : vector<8x96xf32> to vector<8x16xf32>
    %176 = vector.extract_strided_slice %171 {offsets = [0, 32], sizes = [8, 16], strides = [1, 1]} : vector<8x96xf32> to vector<8x16xf32>
    %177 = vector.extract_strided_slice %171 {offsets = [0, 64], sizes = [8, 16], strides = [1, 1]} : vector<8x96xf32> to vector<8x16xf32>
    %cst_91 = arith.constant dense<0.000000e+00> : vector<8x8xf32>
    %178 = tpu.matmul %175, %176, %cst_91 {dimension_numbers = #tpu.dot_dimension_numbers<[1], [1], [0], [0], [0, 0, 1, 0], [], []>} : vector<8x16xf32>, vector<8x16xf32>, vector<8x8xf32> -> vector<8x8xf32>
    %cst_92 = arith.constant 2.500000e-01 : f32
    %179 = vector.broadcast %cst_92 : f32 to vector<8x8xf32>
    %180 = arith.mulf %178, %179 : vector<8x8xf32>
    %181 = vector.broadcast %29 : vector<1x8xf32> to vector<8x8xf32>
    %182 = arith.addf %180, %181 : vector<8x8xf32>
    %cst_93 = arith.constant dense<0xFF800000> : vector<8xf32>
    %183 = vector.multi_reduction <maximumf>, %182, %cst_93 [1] : vector<8x8xf32> to vector<8xf32>
    %184 = vector.shape_cast %183 : vector<8xf32> to vector<8x1xf32>
    %185 = vector.broadcast %184 : vector<8x1xf32> to vector<8x8xf32>
    %186 = arith.subf %182, %185 : vector<8x8xf32>
    %187 = math.exp %186 : vector<8x8xf32>
    %cst_94 = arith.constant dense<0.000000e+00> : vector<8xf32>
    %188 = vector.multi_reduction <add>, %187, %cst_94 [1] : vector<8x8xf32> to vector<8xf32>
    %189 = vector.shape_cast %188 : vector<8xf32> to vector<8x1xf32>
    %190 = tpu.reciprocal %189 {approx = true} : vector<8x1xf32> -> vector<8x1xf32>
    %191 = vector.broadcast %190 : vector<8x1xf32> to vector<8x8xf32>
    %192 = arith.mulf %187, %191 : vector<8x8xf32>
    %cst_95 = arith.constant dense<0.000000e+00> : vector<8x16xf32>
    %193 = tpu.matmul %192, %177, %cst_95 {dimension_numbers = #tpu.dot_dimension_numbers<[1], [0], [0], [1], [0, 0, 1, 1], [], []>} : vector<8x8xf32>, vector<8x16xf32>, vector<8x16xf32> -> vector<8x16xf32>
    %194 = vector.extract_strided_slice %173 {offsets = [0, 0], sizes = [16, 32], strides = [1, 1]} : vector<32x32xf32> to vector<16x32xf32>
    %cst_96 = arith.constant dense<0.000000e+00> : vector<8x32xf32>
    %195 = tpu.matmul %193, %194, %cst_96 {dimension_numbers = #tpu.dot_dimension_numbers<[1], [0], [0], [1], [0, 0, 1, 1], [], []>} : vector<8x16xf32>, vector<16x32xf32>, vector<8x32xf32> -> vector<8x32xf32>
    %196 = arith.addf %174, %195 : vector<8x32xf32>
    %197 = vector.extract_strided_slice %171 {offsets = [0, 16], sizes = [8, 16], strides = [1, 1]} : vector<8x96xf32> to vector<8x16xf32>
    %198 = vector.extract_strided_slice %171 {offsets = [0, 48], sizes = [8, 16], strides = [1, 1]} : vector<8x96xf32> to vector<8x16xf32>
    %199 = vector.extract_strided_slice %171 {offsets = [0, 80], sizes = [8, 16], strides = [1, 1]} : vector<8x96xf32> to vector<8x16xf32>
    %cst_97 = arith.constant dense<0.000000e+00> : vector<8x8xf32>
    %200 = tpu.matmul %197, %198, %cst_97 {dimension_numbers = #tpu.dot_dimension_numbers<[1], [1], [0], [0], [0, 0, 1, 0], [], []>} : vector<8x16xf32>, vector<8x16xf32>, vector<8x8xf32> -> vector<8x8xf32>
    %cst_98 = arith.constant 2.500000e-01 : f32
    %201 = vector.broadcast %cst_98 : f32 to vector<8x8xf32>
    %202 = arith.mulf %200, %201 : vector<8x8xf32>
    %203 = vector.broadcast %29 : vector<1x8xf32> to vector<8x8xf32>
    %204 = arith.addf %202, %203 : vector<8x8xf32>
    %cst_99 = arith.constant dense<0xFF800000> : vector<8xf32>
    %205 = vector.multi_reduction <maximumf>, %204, %cst_99 [1] : vector<8x8xf32> to vector<8xf32>
    %206 = vector.shape_cast %205 : vector<8xf32> to vector<8x1xf32>
    %207 = vector.broadcast %206 : vector<8x1xf32> to vector<8x8xf32>
    %208 = arith.subf %204, %207 : vector<8x8xf32>
    %209 = math.exp %208 : vector<8x8xf32>
    %cst_100 = arith.constant dense<0.000000e+00> : vector<8xf32>
    %210 = vector.multi_reduction <add>, %209, %cst_100 [1] : vector<8x8xf32> to vector<8xf32>
    %211 = vector.shape_cast %210 : vector<8xf32> to vector<8x1xf32>
    %212 = tpu.reciprocal %211 {approx = true} : vector<8x1xf32> -> vector<8x1xf32>
    %213 = vector.broadcast %212 : vector<8x1xf32> to vector<8x8xf32>
    %214 = arith.mulf %209, %213 : vector<8x8xf32>
    %cst_101 = arith.constant dense<0.000000e+00> : vector<8x16xf32>
    %215 = tpu.matmul %214, %199, %cst_101 {dimension_numbers = #tpu.dot_dimension_numbers<[1], [0], [0], [1], [0, 0, 1, 1], [], []>} : vector<8x8xf32>, vector<8x16xf32>, vector<8x16xf32> -> vector<8x16xf32>
    %216 = vector.extract_strided_slice %173 {offsets = [16, 0], sizes = [16, 32], strides = [1, 1]} : vector<32x32xf32> to vector<16x32xf32>
    %cst_102 = arith.constant dense<0.000000e+00> : vector<8x32xf32>
    %217 = tpu.matmul %215, %216, %cst_102 {dimension_numbers = #tpu.dot_dimension_numbers<[1], [0], [0], [1], [0, 0, 1, 1], [], []>} : vector<8x16xf32>, vector<16x32xf32>, vector<8x32xf32> -> vector<8x32xf32>
    %218 = arith.addf %196, %217 : vector<8x32xf32>
    %c1_103 = arith.constant 1 : index
    %c0_104 = arith.constant 0 : index
    %c0_105 = arith.constant 0 : index
    %219 = vector.load %arg8[%c1_103, %c0_104, %c0_105] : memref<2x1x32xf32, #tpu.memory_space<vmem>>, vector<1x1x32xf32>
    %220 = vector.shape_cast %219 : vector<1x1x32xf32> to vector<1x32xf32>
    %221 = vector.broadcast %220 : vector<1x32xf32> to vector<8x32xf32>
    %222 = arith.addf %218, %221 : vector<8x32xf32>
    %223 = arith.addf %164, %222 : vector<8x32xf32>
    %c1_106 = arith.constant 1 : index
    %c0_107 = arith.constant 0 : index
    %c0_108 = arith.constant 0 : index
    %224 = vector.load %arg9[%c1_106, %c0_107, %c0_108] : memref<2x1x32xf32, #tpu.memory_space<vmem>>, vector<1x1x32xf32>
    %225 = vector.shape_cast %224 : vector<1x1x32xf32> to vector<1x32xf32>
    %c1_109 = arith.constant 1 : index
    %c0_110 = arith.constant 0 : index
    %c0_111 = arith.constant 0 : index
    %226 = vector.load %arg10[%c1_109, %c0_110, %c0_111] : memref<2x1x32xf32, #tpu.memory_space<vmem>>, vector<1x1x32xf32>
    %227 = vector.shape_cast %226 : vector<1x1x32xf32> to vector<1x32xf32>
    %cst_112 = arith.constant dense<0.000000e+00> : vector<8xf32>
    %228 = vector.multi_reduction <add>, %223, %cst_112 [1] : vector<8x32xf32> to vector<8xf32>
    %229 = vector.shape_cast %228 : vector<8xf32> to vector<8x1xf32>
    %cst_113 = arith.constant 3.200000e+01 : f32
    %230 = vector.broadcast %cst_113 : f32 to vector<8x1xf32>
    %231 = arith.divf %229, %230 : vector<8x1xf32>
    %232 = vector.broadcast %231 : vector<8x1xf32> to vector<8x32xf32>
    %233 = arith.subf %223, %232 : vector<8x32xf32>
    %234 = arith.mulf %233, %233 : vector<8x32xf32>
    %cst_114 = arith.constant dense<0.000000e+00> : vector<8xf32>
    %235 = vector.multi_reduction <add>, %234, %cst_114 [1] : vector<8x32xf32> to vector<8xf32>
    %236 = vector.shape_cast %235 : vector<8xf32> to vector<8x1xf32>
    %cst_115 = arith.constant 3.200000e+01 : f32
    %237 = vector.broadcast %cst_115 : f32 to vector<8x1xf32>
    %238 = arith.divf %236, %237 : vector<8x1xf32>
    %cst_116 = arith.constant 9.99999996E-13 : f32
    %239 = vector.broadcast %cst_116 : f32 to vector<8x1xf32>
    %240 = arith.addf %238, %239 : vector<8x1xf32>
    %241 = math.rsqrt %240 : vector<8x1xf32>
    %242 = vector.broadcast %241 : vector<8x1xf32> to vector<8x32xf32>
    %243 = arith.mulf %233, %242 : vector<8x32xf32>
    %244 = vector.broadcast %225 : vector<1x32xf32> to vector<8x32xf32>
    %245 = arith.mulf %243, %244 : vector<8x32xf32>
    %246 = vector.broadcast %227 : vector<1x32xf32> to vector<8x32xf32>
    %247 = arith.addf %245, %246 : vector<8x32xf32>
    %c1_117 = arith.constant 1 : index
    %c0_118 = arith.constant 0 : index
    %c0_119 = arith.constant 0 : index
    %248 = vector.load %arg11[%c1_117, %c0_118, %c0_119] : memref<2x32x64xf32, #tpu.memory_space<vmem>>, vector<1x32x64xf32>
    %249 = vector.shape_cast %248 : vector<1x32x64xf32> to vector<32x64xf32>
    %cst_120 = arith.constant dense<0.000000e+00> : vector<8x64xf32>
    %250 = tpu.matmul %247, %249, %cst_120 {dimension_numbers = #tpu.dot_dimension_numbers<[1], [0], [0], [1], [0, 0, 1, 1], [], []>} : vector<8x32xf32>, vector<32x64xf32>, vector<8x64xf32> -> vector<8x64xf32>
    %c1_121 = arith.constant 1 : index
    %c0_122 = arith.constant 0 : index
    %c0_123 = arith.constant 0 : index
    %251 = vector.load %arg12[%c1_121, %c0_122, %c0_123] : memref<2x1x64xf32, #tpu.memory_space<vmem>>, vector<1x1x64xf32>
    %252 = vector.shape_cast %251 : vector<1x1x64xf32> to vector<1x64xf32>
    %253 = vector.broadcast %252 : vector<1x64xf32> to vector<8x64xf32>
    %254 = arith.addf %250, %253 : vector<8x64xf32>
    %cst_124 = arith.constant 5.000000e-01 : f32
    %255 = vector.broadcast %cst_124 : f32 to vector<8x64xf32>
    %256 = arith.mulf %255, %254 : vector<8x64xf32>
    %cst_125 = arith.constant 4.471500e-02 : f32
    %257 = vector.broadcast %cst_125 : f32 to vector<8x64xf32>
    %258 = arith.mulf %257, %254 : vector<8x64xf32>
    %259 = arith.mulf %258, %254 : vector<8x64xf32>
    %260 = arith.mulf %259, %254 : vector<8x64xf32>
    %261 = arith.addf %254, %260 : vector<8x64xf32>
    %cst_126 = arith.constant 0.797884583 : f32
    %262 = vector.broadcast %cst_126 : f32 to vector<8x64xf32>
    %263 = arith.mulf %262, %261 : vector<8x64xf32>
    %264 = math.tanh %263 : vector<8x64xf32>
    %cst_127 = arith.constant 1.000000e+00 : f32
    %265 = vector.broadcast %cst_127 : f32 to vector<8x64xf32>
    %266 = arith.addf %265, %264 : vector<8x64xf32>
    %267 = arith.mulf %256, %266 : vector<8x64xf32>
    %c1_128 = arith.constant 1 : index
    %c0_129 = arith.constant 0 : index
    %c0_130 = arith.constant 0 : index
    %268 = vector.load %arg13[%c1_128, %c0_129, %c0_130] : memref<2x64x32xf32, #tpu.memory_space<vmem>>, vector<1x64x32xf32>
    %269 = vector.shape_cast %268 : vector<1x64x32xf32> to vector<64x32xf32>
    %cst_131 = arith.constant dense<0.000000e+00> : vector<8x32xf32>
    %270 = tpu.matmul %267, %269, %cst_131 {dimension_numbers = #tpu.dot_dimension_numbers<[1], [0], [0], [1], [0, 0, 1, 1], [], []>} : vector<8x64xf32>, vector<64x32xf32>, vector<8x32xf32> -> vector<8x32xf32>
    %c1_132 = arith.constant 1 : index
    %c0_133 = arith.constant 0 : index
    %c0_134 = arith.constant 0 : index
    %271 = vector.load %arg14[%c1_132, %c0_133, %c0_134] : memref<2x1x32xf32, #tpu.memory_space<vmem>>, vector<1x1x32xf32>
    %272 = vector.shape_cast %271 : vector<1x1x32xf32> to vector<1x32xf32>
    %273 = vector.broadcast %272 : vector<1x32xf32> to vector<8x32xf32>
    %274 = arith.addf %270, %273 : vector<8x32xf32>
    %275 = arith.addf %247, %274 : vector<8x32xf32>
    %c1_135 = arith.constant 1 : index
    %c0_136 = arith.constant 0 : index
    %c0_137 = arith.constant 0 : index
    %276 = vector.load %arg15[%c1_135, %c0_136, %c0_137] : memref<2x1x32xf32, #tpu.memory_space<vmem>>, vector<1x1x32xf32>
    %277 = vector.shape_cast %276 : vector<1x1x32xf32> to vector<1x32xf32>
    %c1_138 = arith.constant 1 : index
    %c0_139 = arith.constant 0 : index
    %c0_140 = arith.constant 0 : index
    %278 = vector.load %arg16[%c1_138, %c0_139, %c0_140] : memref<2x1x32xf32, #tpu.memory_space<vmem>>, vector<1x1x32xf32>
    %279 = vector.shape_cast %278 : vector<1x1x32xf32> to vector<1x32xf32>
    %cst_141 = arith.constant dense<0.000000e+00> : vector<8xf32>
    %280 = vector.multi_reduction <add>, %275, %cst_141 [1] : vector<8x32xf32> to vector<8xf32>
    %281 = vector.shape_cast %280 : vector<8xf32> to vector<8x1xf32>
    %cst_142 = arith.constant 3.200000e+01 : f32
    %282 = vector.broadcast %cst_142 : f32 to vector<8x1xf32>
    %283 = arith.divf %281, %282 : vector<8x1xf32>
    %284 = vector.broadcast %283 : vector<8x1xf32> to vector<8x32xf32>
    %285 = arith.subf %275, %284 : vector<8x32xf32>
    %286 = arith.mulf %285, %285 : vector<8x32xf32>
    %cst_143 = arith.constant dense<0.000000e+00> : vector<8xf32>
    %287 = vector.multi_reduction <add>, %286, %cst_143 [1] : vector<8x32xf32> to vector<8xf32>
    %288 = vector.shape_cast %287 : vector<8xf32> to vector<8x1xf32>
    %cst_144 = arith.constant 3.200000e+01 : f32
    %289 = vector.broadcast %cst_144 : f32 to vector<8x1xf32>
    %290 = arith.divf %288, %289 : vector<8x1xf32>
    %cst_145 = arith.constant 9.99999996E-13 : f32
    %291 = vector.broadcast %cst_145 : f32 to vector<8x1xf32>
    %292 = arith.addf %290, %291 : vector<8x1xf32>
    %293 = math.rsqrt %292 : vector<8x1xf32>
    %294 = vector.broadcast %293 : vector<8x1xf32> to vector<8x32xf32>
    %295 = arith.mulf %285, %294 : vector<8x32xf32>
    %296 = vector.broadcast %277 : vector<1x32xf32> to vector<8x32xf32>
    %297 = arith.mulf %295, %296 : vector<8x32xf32>
    %298 = vector.broadcast %279 : vector<1x32xf32> to vector<8x32xf32>
    %299 = arith.addf %297, %298 : vector<8x32xf32>
    %300 = vector.extract_strided_slice %299 {offsets = [0, 0], sizes = [1, 32], strides = [1, 1]} : vector<8x32xf32> to vector<1x32xf32>
    %c0_146 = arith.constant 0 : index
    %c0_147 = arith.constant 0 : index
    %301 = vector.load %arg17[%c0_146, %c0_147] : memref<32x32xf32, #tpu.memory_space<vmem>>, vector<32x32xf32>
    %cst_148 = arith.constant dense<0.000000e+00> : vector<1x32xf32>
    %302 = tpu.matmul %300, %301, %cst_148 {dimension_numbers = #tpu.dot_dimension_numbers<[1], [0], [0], [1], [0, 0, 1, 1], [], []>} : vector<1x32xf32>, vector<32x32xf32>, vector<1x32xf32> -> vector<1x32xf32>
    %c0_149 = arith.constant 0 : index
    %c0_150 = arith.constant 0 : index
    %303 = vector.load %arg18[%c0_149, %c0_150] : memref<1x32xf32, #tpu.memory_space<vmem>>, vector<1x32xf32>
    %304 = arith.addf %302, %303 : vector<1x32xf32>
    %305 = math.tanh %304 : vector<1x32xf32>
    %c0_151 = arith.constant 0 : index
    %c0_152 = arith.constant 0 : index
    %c0_153 = arith.constant 0 : index
    %306 = vector.load %arg19[%c0_151, %c0_152, %c0_153] : memref<1x1x32xf32, #tpu.memory_space<vmem>>, vector<1x1x32xf32>
    %307 = vector.shape_cast %306 : vector<1x1x32xf32> to vector<1x32xf32>
    %308 = vector.shape_cast %305 : vector<1x32xf32> to vector<1x1x32xf32>
    tpu.vector_store %arg19[%c0_151, %c0_152, %c0_153], %308 {strides = array<i32>} : memref<1x1x32xf32, #tpu.memory_space<vmem>>, vector<1x1x32xf32>,
    return
  }
  func.func @transform_0(%arg0: i32) -> (i32, i32, i32) {
    %c0_i32 = arith.constant 0 : i32
    %c0_i32_0 = arith.constant 0 : i32
    %c0_i32_1 = arith.constant 0 : i32
    return %arg0, %c0_i32, %c0_i32_0 : i32, i32, i32
  }
  func.func @transform_1(%arg0: i32) -> (i32, i32, i32) {
    %c0_i32 = arith.constant 0 : i32
    %c0_i32_0 = arith.constant 0 : i32
    %c0_i32_1 = arith.constant 0 : i32
    return %arg0, %c0_i32, %c0_i32_0 : i32, i32, i32
  }
  func.func @transform_2(%arg0: i32) -> (i32, i32) {
    %c0_i32 = arith.constant 0 : i32
    %c0_i32_0 = arith.constant 0 : i32
    %c0_i32_1 = arith.constant 0 : i32
    return %c0_i32, %c0_i32_0 : i32, i32
  }
  func.func @transform_3(%arg0: i32) -> (i32, i32) {
    %c0_i32 = arith.constant 0 : i32
    %c0_i32_0 = arith.constant 0 : i32
    %c0_i32_1 = arith.constant 0 : i32
    return %c0_i32, %c0_i32_0 : i32, i32
  }
  func.func @transform_4(%arg0: i32) -> (i32, i32, i32) {
    %c0_i32 = arith.constant 0 : i32
    %c0_i32_0 = arith.constant 0 : i32
    %c0_i32_1 = arith.constant 0 : i32
    %c0_i32_2 = arith.constant 0 : i32
    return %c0_i32, %c0_i32_0, %c0_i32_1 : i32, i32, i32
  }
  func.func @transform_5(%arg0: i32) -> (i32, i32, i32) {
    %c0_i32 = arith.constant 0 : i32
    %c0_i32_0 = arith.constant 0 : i32
    %c0_i32_1 = arith.constant 0 : i32
    %c0_i32_2 = arith.constant 0 : i32
    return %c0_i32, %c0_i32_0, %c0_i32_1 : i32, i32, i32
  }
  func.func @transform_6(%arg0: i32) -> (i32, i32, i32) {
    %c0_i32 = arith.constant 0 : i32
    %c0_i32_0 = arith.constant 0 : i32
    %c0_i32_1 = arith.constant 0 : i32
    %c0_i32_2 = arith.constant 0 : i32
    return %c0_i32, %c0_i32_0, %c0_i32_1 : i32, i32, i32
  }
  func.func @transform_7(%arg0: i32) -> (i32, i32, i32) {
    %c0_i32 = arith.constant 0 : i32
    %c0_i32_0 = arith.constant 0 : i32
    %c0_i32_1 = arith.constant 0 : i32
    %c0_i32_2 = arith.constant 0 : i32
    return %c0_i32, %c0_i32_0, %c0_i32_1 : i32, i32, i32
  }
  func.func @transform_8(%arg0: i32) -> (i32, i32, i32) {
    %c0_i32 = arith.constant 0 : i32
    %c0_i32_0 = arith.constant 0 : i32
    %c0_i32_1 = arith.constant 0 : i32
    %c0_i32_2 = arith.constant 0 : i32
    return %c0_i32, %c0_i32_0, %c0_i32_1 : i32, i32, i32
  }
  func.func @transform_9(%arg0: i32) -> (i32, i32, i32) {
    %c0_i32 = arith.constant 0 : i32
    %c0_i32_0 = arith.constant 0 : i32
    %c0_i32_1 = arith.constant 0 : i32
    %c0_i32_2 = arith.constant 0 : i32
    return %c0_i32, %c0_i32_0, %c0_i32_1 : i32, i32, i32
  }
  func.func @transform_10(%arg0: i32) -> (i32, i32, i32) {
    %c0_i32 = arith.constant 0 : i32
    %c0_i32_0 = arith.constant 0 : i32
    %c0_i32_1 = arith.constant 0 : i32
    %c0_i32_2 = arith.constant 0 : i32
    return %c0_i32, %c0_i32_0, %c0_i32_1 : i32, i32, i32
  }
  func.func @transform_11(%arg0: i32) -> (i32, i32, i32) {
    %c0_i32 = arith.constant 0 : i32
    %c0_i32_0 = arith.constant 0 : i32
    %c0_i32_1 = arith.constant 0 : i32
    %c0_i32_2 = arith.constant 0 : i32
    return %c0_i32, %c0_i32_0, %c0_i32_1 : i32, i32, i32
  }
  func.func @transform_12(%arg0: i32) -> (i32, i32, i32) {
    %c0_i32 = arith.constant 0 : i32
    %c0_i32_0 = arith.constant 0 : i32
    %c0_i32_1 = arith.constant 0 : i32
    %c0_i32_2 = arith.constant 0 : i32
    return %c0_i32, %c0_i32_0, %c0_i32_1 : i32, i32, i32
  }
  func.func @transform_13(%arg0: i32) -> (i32, i32, i32) {
    %c0_i32 = arith.constant 0 : i32
    %c0_i32_0 = arith.constant 0 : i32
    %c0_i32_1 = arith.constant 0 : i32
    %c0_i32_2 = arith.constant 0 : i32
    return %c0_i32, %c0_i32_0, %c0_i32_1 : i32, i32, i32
  }
  func.func @transform_14(%arg0: i32) -> (i32, i32, i32) {
    %c0_i32 = arith.constant 0 : i32
    %c0_i32_0 = arith.constant 0 : i32
    %c0_i32_1 = arith.constant 0 : i32
    %c0_i32_2 = arith.constant 0 : i32
    return %c0_i32, %c0_i32_0, %c0_i32_1 : i32, i32, i32
  }
  func.func @transform_15(%arg0: i32) -> (i32, i32, i32) {
    %c0_i32 = arith.constant 0 : i32
    %c0_i32_0 = arith.constant 0 : i32
    %c0_i32_1 = arith.constant 0 : i32
    %c0_i32_2 = arith.constant 0 : i32
    return %c0_i32, %c0_i32_0, %c0_i32_1 : i32, i32, i32
  }
  func.func @transform_16(%arg0: i32) -> (i32, i32) {
    %c0_i32 = arith.constant 0 : i32
    %c0_i32_0 = arith.constant 0 : i32
    %c0_i32_1 = arith.constant 0 : i32
    return %c0_i32, %c0_i32_0 : i32, i32
  }
  func.func @transform_17(%arg0: i32) -> (i32, i32) {
    %c0_i32 = arith.constant 0 : i32
    %c0_i32_0 = arith.constant 0 : i32
    %c0_i32_1 = arith.constant 0 : i32
    return %c0_i32, %c0_i32_0 : i32, i32
  }
  func.func @transform_18(%arg0: i32) -> (i32, i32, i32) {
    %c0_i32 = arith.constant 0 : i32
    %c0_i32_0 = arith.constant 0 : i32
    %c0_i32_1 = arith.constant 0 : i32
    return %arg0, %c0_i32, %c0_i32_0 : i32, i32, i32
  }
}

</mosaic_0001>

<bundles_post_ra>
// kernel: bert_encoder_forward.1
= control target key start
LH: loop header
LB: loop body
LE: loop exit
PB: predicated region body
PF: predicated region fallthrough
CT: control target
= control target key end

     0   :  { %s3426_s0 = inlined_call_operand.vmem [shape: f32[2,8,32], index: 0, kind: input, shape index: {}]   ;;  %s3427_s1 = inlined_call_operand.vmem [shape: f32[2,1,8], index: 1, kind: input, shape index: {}]   ;;  %s3428_s2 = inlined_call_operand.vmem [shape: f32[1,32], index: 2, kind: input, shape index: {}]   ;;  %s3429_s3 = inlined_call_operand.vmem [shape: f32[1,32], index: 3, kind: input, shape index: {}]   ;;  %s3430_s4 = inlined_call_operand.vmem [shape: f32[2,32,96], index: 4, kind: input, shape index: {}]   ;;  %s3431_s5 = inlined_call_operand.vmem [shape: f32[2,1,96], index: 5, kind: input, shape index: {}]   ;;  %s3432_s6 = inlined_call_operand.vmem [shape: f32[2,32,32], index: 6, kind: input, shape index: {}]   ;;  %s3433_s7 = inlined_call_operand.vmem [shape: f32[2,1,32], index: 7, kind: input, shape index: {}]   ;;  %s3434_s8 = inlined_call_operand.vmem [shape: f32[2,1,32], index: 8, kind: input, shape index: {}]   ;;  %s3435_s9 = inlined_call_operand.vmem [shape: f32[2,1,32], index: 9, kind: input, shape index: {}]   ;;  %s3436_s10 = inlined_call_operand.vmem [shape: f32[2,32,64], index: 10, kind: input, shape index: {}]   ;;  %s3437_s11 = inlined_call_operand.vmem [shape: f32[2,1,64], index: 11, kind: input, shape index: {}]   ;;  %s3438_s12 = inlined_call_operand.vmem [shape: f32[2,64,32], index: 12, kind: input, shape index: {}]   ;;  %s3439_s13 = inlined_call_operand.vmem [shape: f32[2,1,32], index: 13, kind: input, shape index: {}]   ;;  %s3440_s14 = inlined_call_operand.vmem [shape: f32[2,1,32], index: 14, kind: input, shape index: {}]   ;;  %s3441_s15 = inlined_call_operand.vmem [shape: f32[2,1,32], index: 15, kind: input, shape index: {}]   ;;  %s3442_s16 = inlined_call_operand.vmem [shape: f32[32,32], index: 16, kind: input, shape index: {}]   ;;  %s3443_s17 = inlined_call_operand.vmem [shape: f32[1,32], index: 17, kind: input, shape index: {}]   ;;  %s3444_s18 = inlined_call_operand.hbm [shape: f32[2,1,32], index: 18, kind: output, shape index: {}]  }
   0x1   :  { %3451 = sst [smem:[#allocation7_spill]] %s3426_s0 }
   0x2   :  { %3452 = sst [smem:[#allocation8_spill]] %s3427_s1 }
   0x3   :  { %3453 = sst [smem:[#allocation9_spill]] %s3428_s2 }
   0x4   :  { %3454 = sst [smem:[#allocation10_spill]] %s3429_s3 }
   0x5   :  { %3455 = sst [smem:[#allocation11_spill]] %s3430_s4 }
   0x6   :  { %3456 = sst [smem:[#allocation12_spill]] %s3431_s5 }
   0x7   :  { %23 = vsyncpa [#allocation3], 0 }
   0x8   :  { %25 = vsyncpa [#allocation3 + $0x1], 0  ;;  %s2982_s27 = smov 0   ;;  %s2984_s28 = smov 0  }
   0x9   :  { %s2986_s29 = smov 0   ;;  %s2988_s30 = smov 0  }
   0xa LB: > { %3457 = sst [smem:[#allocation5_spill]] %s2873_s29  ;;  %s3003_s0 = sadd.s32 4294967295, %s2877_s30   ;;  %s2877_s30 = sphi %s2988_s30, %s3476_s30   ;;  %s2873_s29 = sphi %s2986_s29, %s3473_s29   ;;  %s2869_s28 = sphi %s2984_s28, %s3475_s28   ;;  %s2865_s27 = sphi %s2982_s27, %s3474_s27  }
   0xb   : > { %s2430_s19 = sadd.s32 4294967294, %s2877_s30   ;;  %s3007_s1 = sadd.s32 1, %s2877_s30  }
   0xc   : > { %s426_s20 = sadd.s32 1, %s2873_s29  ;;  %s423_s21 = ssub.s32 %s2877_s30, %s3007_s1 }
   0xd   : > { %p436_p0 = scmp.ne.s32.totalorder %s2873_s29, %s2869_s28  ;;  %p424_p1 = scmp.eq.s32.totalorder %s423_s21, 0 }
   0xe   : > { %p437_p2 = scmp.eq.s32.totalorder %s3003_s0, 1  ;;  %p442_p3 = scmp.ne.s32.totalorder %s2869_s28, %s2865_s27 }
   0xf   : > { %p443_p4 = scmp.eq.s32.totalorder %s2430_s19, 1  ;;  %p2433_p7 = scmp.ge.s32.totalorder %s2877_s30, 1 }
  0x10   : > { %s3018_s22 = scalar_select %p424_p1, %s2873_s29, %s426_s20  }
  0x11   : > { %p3020_p5 = por %p437_p2, %p436_p0  ;;  %p3024_p6 = por %p443_p4, %p442_p3 }
  0x12   : > { %3458 = sst [smem:[#allocation6_spill]] %s3018_s22  ;;  %p522_p8 = scmp.lt.s32.totalorder %s2877_s30, 3 }
  0x14   : > { %p523_p9 = pnand %p2433_p7, %p522_p8 }
  0x15   : > { %p577_p10 = scmp.lt.s32.totalorder (!%p523_p9), %s3003_s0, 1  ;;  %s3461_s20 = sld [smem:[#allocation7_spill]] (!%p523_p9) }
  0x16   : > { %526 = sbr.rel (%p523_p9) target bundleno = 5070 (0x13ce), region = 92  ;;  %s3462_s4 = sld [smem:[#allocation11_spill]] (!%p523_p9) }
  0x17   : > { %s3464_s3 = sld [smem:[#allocation10_spill]] (!%p523_p9)  ;;  %s3449_s26 = smov (!%p523_p9), 96  }
  0x18   : > { %s3465_s5 = sld [smem:[#allocation12_spill]] (!%p523_p9)  ;;  %s3446_s19 = smov (!%p523_p9), 64  }
  0x19   : > { %s3466_s29 = sld [smem:[#allocation8_spill]] (!%p523_p9) }
  0x1b   : > { %s3032_s24 = scalar_select %p577_p10, %s3003_s0, 1  ;;  %vm587_vm0 = vcmask 261120   ;;  %v2879_v8 = vmov 0.0   ;;  %vm2880_vm1 = vmmov 0   ;;  %vm710_vm2 = vcmask 130048   ;;  %v704_v63 = vld [vmem:[%s3432_s6 + $0x8] sm:$0xff] }
  0x1c   : > { %v622_v7 = vld [vmem:[%s3462_s4 + $0x18] sm:$0xff]  ;;  %2578 = vmatprep.subr.mxu0 %v2879_v8  ;;  %v621_v9 = vld [vmem:[%s3462_s4 + $0x10] sm:$0xff]  ;;  %2586 = vmatprep.mubr.msk.f32.mxu0 %vm2880_vm1, %v2879_v8  ;;  %v620_v10 = vld [vmem:[%s3462_s4 + $0x8] sm:$0xff]  ;;  %v787_v28 = vlaneseq  ;;  %vm793_vm3 = vcmask 64512   ;;  %vm1340_vm4 = vcmask 523264   ;;  %vm2351_vm5 = vcmask 253952  }
  0x1d   : > { %s2434_s25 = sshll.u32 %s3032_s24, 3  ;;  %2579 = vmatpush3.msra.mxu0 %v622_v7  ;;  %2589 = vmatprep.subr.mxu1 %v2879_v8  ;;  %v619_v11 = vld [vmem:[%s3462_s4] sm:$0xff] }
  0x1e   : > { %s580_s21 = scalar_lea.vmem %s3461_s20, %s2434_s25  ;;  %2580 = vmatprep.subr.mxu0 %v2879_v8  ;;  %2591 = vmatprep.mubr.msk.f32.mxu1 %vm2880_vm1, %v2879_v8  ;;  %s3463_s25 = sld [smem:[#allocation9_spill]]  ;;  %v2436_v18 = vld [vmem:[%s3464_s3] ss:$0 sm:$0xff]  ;;  %v788_v31 = vshrl.u32 %v787_v28, 7 }
  0x1f   : > { %v584_v0 = vld [vmem:[%s580_s21] sm:$0xff]  ;;  %2581 = vmatpush3.msra.mxu0 %v621_v9  ;;  %s3448_s21 = smov 112   ;;  %s583_s22 = scalar_lea.vmem %s3466_s29, %s3032_s24 }
  0x20   : > { %v588_v1 = vsel %vm587_vm0, %v584_v0, 0.0  ;;  %2582 = vmatprep.subr.mxu0 %v2879_v8  ;;  %v2437_v21 = vld [vmem:[%s3465_s5] ss:$0 sm:$0xff]  ;;  %v789_v33 = vsub.s32 0, %v788_v31  ;;  %s3447_s24 = smov 48   ;;  %s3471_s20 = smov 64  }
  0x21   : > { %589 = vadd.xlane.f32.xlu0 %v588_v1  ;;  %2583 = vmatpush3.msra.mxu0 %v620_v10  ;;  %v616_v29 = vld [vmem:[%s583_s22] sm:$0x1]  ;;  %v706_v1 = vld [vmem:[%s3432_s6 + $0x18] sm:$0xff]  ;;  %s3470_s22 = smov 48   ;;  %s575_s29 = sand.u32 1, %s2869_s28  }
  0x22   : > { %2584 = vmatprep.subr.mxu0 %v2879_v8  ;;  %v617_v30 = vsub.f32 1.0, %v616_v29 }
  0x23   : > { %2585 = vmatpush3.msra.mxu0 %v619_v11  ;;  %v2447_v11 = vld [vmem:[%s3433_s7] ss:$0 sm:$0xff] }
  0x24   : > { %2599 = vmatprep.subr.mxu0 %v2879_v8  ;;  %v2435_v16 = vld [vmem:[%s3463_s25] ss:$0 sm:$0xff]  ;;  %s3450_s25 = smov 80   ;;  %v618_v32 = vmul.f32 -10000.0, %v617_v30 }
  0x25   : > { %v2448_v30 = vld [vmem:[%s3434_s8] ss:$0 sm:$0xff] }
  0x26   : > { %v3094_v34 = vrot.slane %v618_v32, %v789_v33  ;;  %v2449_v32 = vld [vmem:[%s3435_s9] ss:$0 sm:$0xff] }
  0xaa   : > { %v590_v2 = vpop.xlane.xlu0 %589 }
  0xab   : > { %v592_v3 = vmul.f32 0.03125, %v590_v2  ;;  %v705_v2 = vld [vmem:[%s3432_s6 + $0x10] sm:$0xff] }
  0xad   : > { %v593_v4 = vsub.f32 %v584_v0, %v592_v3  ;;  %v703_v0 = vld [vmem:[%s3432_s6] sm:$0xff] }
  0xaf   : > { %v594_v5 = vmul.f32 %v593_v4, %v593_v4 }
  0xb1   : > { %v595_v6 = vsel %vm587_vm0, %v594_v5, 0.0 }
  0xb2   : > { %596 = vadd.xlane.f32.xlu0 %v595_v6 }
 0x13b   : > { %v597_v12 = vpop.xlane.xlu0 %596 }
 0x13c   : > { %v598_v13 = vmul.f32 0.03125, %v597_v12 }
 0x13e   : > { %v599_v14 = vadd.f32 1e-12, %v598_v13 }
 0x140   : > { %2785 = vrsqrt.f32 %v599_v14 }
 0x14d   : > { %v2786_v15 = vpop.eup %2785 }
 0x14e   : > { %v601_v17 = vmul.f32 %v2786_v15, %v593_v4 }
 0x150   : > { %v608_v19 = vmul.f32 %v2435_v16, %v601_v17 }
 0x152   : > { %v3068_v20 = vadd.f32 %v2436_v18, %v608_v19 }
 0x154   : > { %2587 = vmatmul.mubr.msk.f32.vlgmr.msra.gmra.mxu0 %vm587_vm0, %v3068_v20 }
 0x155   : > { %2601 = vmatprep.mubr.msk.f32.mxu0 %vm2880_vm1, %v2879_v8 }
 0x214   : > { %v699_v22 = vpop.f32.mrf.mxu0 }
 0x215   : > { %v700_v23 = vadd.f32 %v2437_v21, %v699_v22 }
 0x216   : > { %v2588_v24 = vpop.f32.mrf.mxu0 }
 0x217   : > { %881 = vrot.lane.b32.xlu0 %v700_v23, %s3448_s21  ;;  %708 = vrot.lane.b32.xlu1 %v700_v23, %s3449_s26  ;;  %v1234_v24 = vld [vmem:[%s3436_s10 + $0x10] sm:$0xff]  ;;  %s3467_s21 = smov 80   ;;  %s2504_s26 = sshll.u32 %s3003_s0, 4 }
 0x218   : > { %s3391_s3 = scalar_lea.hbm %s3444_s18, %s2504_s26 }
 0x21b   : > { %883 = vrot.lane.b32.xlu1 %v700_v23, %s3450_s25  ;;  %s576_s25 = scalar_lea.vmem [#allocation2], %s575_s29 }
 0x289   : > { %v709_v25 = vpop.permute.xlu1 %708  ;;  %v882_v27 = vpop.permute.xlu0 %881 }
 0x28a   : > { %2590 = vmatpush3.xpose.msk.msra.mxu1 %vm710_vm2, %v709_v25  ;;  %v1232_v25 = vld [vmem:[%s3436_s10] sm:$0xff] }
 0x28b   : > { %2594 = vmatprep.subr.mxu1 %v2879_v8 }
 0x28d   : > { %2592 = vmatmul.mubr.msk.f32.vlgmr.msra.gmra.mxu1 %vm710_vm2, %v700_v23  ;;  %v884_v26 = vpop.permute.xlu1 %883 }
 0x28e   : > { %2600 = vmatpush3.xpose.msk.msra.mxu0 %vm710_vm2, %v884_v26  ;;  %2596 = vmatprep.mubr.msk.f32.mxu1 %vm2880_vm1, %v2879_v8 }
 0x28f   : > { %2609 = vmatprep.subr.mxu0 %v2879_v8 }
 0x291   : > { %2602 = vmatmul.mubr.msk.f32.vlgmr.msra.gmra.mxu0 %vm710_vm2, %v882_v27 }
 0x292   : > { %2613 = vmatprep.mubr.msk.f32.mxu0 %vm2880_vm1, %v2879_v8  ;;  %2610 = vmatpush3.msra.mxu0 %v706_v1 }
 0x293   : > { %2611 = vmatprep.subr.mxu0 %v2879_v8 }
 0x294   : > { %2612 = vmatpush3.msra.mxu0 %v705_v2 }
 0x295   : > { %2623 = vmatprep.subr.mxu0 %v2879_v8 }
 0x34d   : > { %v781_v35 = vpop.f32.mrf.mxu1 }
 0x34e   : > { %v785_v36 = vmul.f32 0.25, %v781_v35 }
 0x34f   : > { %v2593_v37 = vpop.f32.mrf.mxu1 }
 0x350   : > { %v792_v38 = vadd.f32 %v3094_v34, %v785_v36  ;;  %v1332_v36 = vld [vmem:[%s3438_s12 + $0x38] sm:$0xff]  ;;  %v1331_v37 = vld [vmem:[%s3438_s12 + $0x30] sm:$0xff] }
 0x351   : > { %v955_v39 = vpop.f32.mrf.mxu0 }
 0x352   : > { %v959_v40 = vmul.f32 0.25, %v955_v39  ;;  %v794_v41 = vsel %vm793_vm3, %v792_v38, -inf  ;;  %v1329_v39 = vld [vmem:[%s3438_s12 + $0x20] sm:$0xff] }
 0x353   : > { %795 = vmax.xlane.f32.xlu1 %v794_v41  ;;  %v2603_v42 = vpop.f32.mrf.mxu0  ;;  %v1327_v41 = vld [vmem:[%s3438_s12 + $0x10] sm:$0xff] }
 0x354   : > { %v960_v43 = vadd.f32 %v959_v40, %v3094_v34  ;;  %v1328_v40 = vld [vmem:[%s3438_s12 + $0x18] sm:$0xff]  ;;  %v1326_v42 = vld [vmem:[%s3438_s12 + $0x8] sm:$0xff] }
 0x356   : > { %v961_v44 = vsel %vm793_vm3, %v960_v43, -inf }
 0x357   : > { %962 = vmax.xlane.f32.xlu0 %v961_v44  ;;  %v2450_v44 = vld [vmem:[%s3437_s11] ss:$0 sm:$0xff] }
 0x36d   : > { %972 = vrot.lane.b32.xlu0 %v700_v23, %s3447_s24  ;;  %s3468_s24 = smov 96  }
 0x3dc   : > { %v796_v45 = vpop.xlane.xlu1 %795 }
 0x3dd   : > { %v797_v46 = vsub.f32 %v792_v38, %v796_v45  ;;  %v1330_v38 = vld [vmem:[%s3438_s12 + $0x28] sm:$0xff] }
 0x3df   : > { %v798_v47 = vmul.f32 1.442695, %v797_v46 }
 0x3e0   : > { %v963_v48 = vpop.xlane.xlu0 %962 }
 0x3e1   : > { %2787 = vpow2.f32 %v798_v47  ;;  %v964_v49 = vsub.f32 %v960_v43, %v963_v48  ;;  %v1325_v43 = vld [vmem:[%s3438_s12] sm:$0xff] }
 0x3e3   : > { %v965_v50 = vmul.f32 1.442695, %v964_v49 }
 0x3e4   : > { %v973_v60 = vpop.permute.xlu0 %972 }
 0x3e5   : > { %2789 = vpow2.f32 %v965_v50 }
 0x3ee   : > { %v2788_v51 = vpop.eup %2787 }
 0x3ef   : > { %v800_v52 = vsel %vm793_vm3, %v2788_v51, 0.0 }
 0x3f0   : > { %801 = vadd.xlane.f32.xlu1 %v800_v52 }
 0x3f2   : > { %v2790_v53 = vpop.eup %2789 }
 0x3f3   : > { %v967_v54 = vsel %vm793_vm3, %v2790_v53, 0.0 }
 0x3f4   : > { %968 = vadd.xlane.f32.xlu1 %v967_v54 }
 0x405   : > { %805 = vrot.lane.b32.xlu1 %v700_v23, %s3446_s19  ;;  %v1235_v23 = vld [vmem:[%s3436_s10 + $0x18] sm:$0xff]  ;;  %s3469_s19 = smov 112  }
 0x479   : > { %v802_v55 = vpop.xlane.xlu1 %801 }
 0x47a   : > { %2791 = vrcp.f32 %v802_v55 }
 0x47d   : > { %v969_v56 = vpop.xlane.xlu1 %968 }
 0x47e   : > { %2793 = vrcp.f32 %v969_v56 }
 0x481   : > { %v806_v57 = vpop.permute.xlu1 %805 }
 0x482   : > { %2595 = vmatpush3.msra.mxu1 %v806_v57  ;;  %v2452_v57 = vld [vmem:[%s3439_s13] ss:$0 sm:$0xff] }
 0x483   : > { %2604 = vmatprep.subr.mxu1 %v2879_v8 }
 0x487   : > { %v2792_v58 = vpop.eup %2791 }
 0x488   : > { %v804_v59 = vmul.f32 %v2792_v58, %v2788_v51 }
 0x48a   : > { %2597 = vmatmul.mubr.msk.f32.vlgmr.msra.gmra.mxu1 %vm793_vm3, %v804_v59 }
 0x48b   : > { %v2794_v61 = vpop.eup %2793  ;;  %2605 = vmatpush3.msra.mxu1 %v973_v60  ;;  %2606 = vmatprep.mubr.msk.f32.mxu1 %vm2880_vm1, %v2879_v8 }
 0x48c   : > { %v971_v62 = vmul.f32 %v2794_v61, %v2790_v53  ;;  %2616 = vmatprep.subr.mxu1 %v2879_v8 }
 0x48e   : > { %2607 = vmatmul.mubr.msk.f32.vlgmr.msra.gmra.mxu1 %vm793_vm3, %v971_v62 }
 0x48f   : > { %2617 = vmatpush3.msra.mxu1 %v704_v63  ;;  %2620 = vmatprep.mubr.msk.f32.mxu1 %vm2880_vm1, %v2879_v8 }
 0x490   : > { %2618 = vmatprep.subr.mxu1 %v2879_v8 }
 0x491   : > { %2619 = vmatpush3.msra.mxu1 %v703_v0 }
 0x492   : > { %2634 = vmatprep.subr.mxu1 %v2879_v8 }
 0x54a   : > { %v877_v3 = vpop.f32.mrf.mxu1 }
 0x54b   : > { %2621 = vmatmul.mubr.msk.f32.vlgmr.msra.gmra.mxu1 %vm710_vm2, %v877_v3 }
 0x54c   : > { %v2598_v4 = vpop.f32.mrf.mxu1  ;;  %2650 = vmatprep.mubr.msk.f32.mxu1 %vm2880_vm1, %v2879_v8  ;;  %2635 = vmatpush3.msra.mxu1 %v1332_v36 }
 0x54d   : > { %2636 = vmatprep.subr.mxu1 %v2879_v8  ;;  %v2459_v4 = vld [vmem:[%s3462_s4 + $0x38] sm:$0xff] }
 0x54e   : > { %v1044_v5 = vpop.f32.mrf.mxu1  ;;  %2637 = vmatpush3.msra.mxu1 %v1331_v37 }
 0x54f   : > { %2614 = vmatmul.mubr.msk.f32.vlgmr.msra.gmra.mxu0 %vm710_vm2, %v1044_v5  ;;  %2638 = vmatprep.subr.mxu1 %v2879_v8  ;;  %v2458_v5 = vld [vmem:[%s3462_s4 + $0x30] sm:$0xff] }
 0x550   : > { %v2608_v6 = vpop.f32.mrf.mxu1  ;;  %2631 = vmatprep.mubr.msk.f32.mxu0 %vm2880_vm1, %v2879_v8  ;;  %2624 = vmatpush3.msra.mxu0 %v1235_v23 }
 0x551   : > { %2625 = vmatprep.subr.mxu0 %v2879_v8  ;;  %2639 = vmatpush3.msra.mxu1 %v1330_v38  ;;  %v2457_v6 = vld [vmem:[%s3462_s4 + $0x28] sm:$0xff] }
 0x552   : > { %2626 = vmatpush3.msra.mxu0 %v1234_v24  ;;  %2640 = vmatprep.subr.mxu1 %v2879_v8 }
 0x553   : > { %2627 = vmatprep.subr.mxu0 %v2879_v8  ;;  %2641 = vmatpush3.msra.mxu1 %v1329_v39 }
 0x554   : > { %2642 = vmatprep.subr.mxu1 %v2879_v8 }
 0x555   : > { %2643 = vmatpush3.msra.mxu1 %v1328_v40 }
 0x556   : > { %2644 = vmatprep.subr.mxu1 %v2879_v8 }
 0x557   : > { %2645 = vmatpush3.msra.mxu1 %v1327_v41 }
 0x558   : > { %2646 = vmatprep.subr.mxu1 %v2879_v8 }
 0x559   : > { %2647 = vmatpush3.msra.mxu1 %v1326_v42 }
 0x55a   : > { %2648 = vmatprep.subr.mxu1 %v2879_v8 }
 0x55b   : > { %2649 = vmatpush3.msra.mxu1 %v1325_v43 }
 0x55c   : > { %2669 = vmatprep.subr.mxu1 %v2879_v8 }
 0x60b   : > { %v1190_v7 = vpop.f32.mrf.mxu1 }
 0x60d   : > { %v2622_v9 = vpop.f32.mrf.mxu1 }
 0x60f   : > { %v1117_v10 = vpop.f32.mrf.mxu0 }
 0x610   : > { %v1191_v12 = vadd.f32 %v1190_v7, %v1117_v10  ;;  %v2456_v7 = vld [vmem:[%s3462_s4 + $0x20] sm:$0xff]  ;;  %s2886_s4 = smov [#allocation2]  }
 0x611   : > { %v2615_v13 = vpop.f32.mrf.mxu0 }
 0x612   : > { %v1201_v14 = vadd.f32 %v2447_v11, %v1191_v12  ;;  %v2454_v13 = vld [vmem:[%s3440_s14] ss:$0 sm:$0xff] }
 0x614   : > { %v1202_v15 = vadd.f32 %v1201_v14, %v3068_v20  ;;  %v1233_v20 = vld [vmem:[%s3436_s10 + $0x8] sm:$0xff] }
 0x615   : > { %2628 = vmatpush3.msra.mxu0 %v1233_v20 }
 0x616   : > { %v1205_v16 = vsel %vm587_vm0, %v1202_v15, 0.0  ;;  %2629 = vmatprep.subr.mxu0 %v2879_v8 }
 0x617   : > { %1206 = vadd.xlane.f32.xlu1 %v1205_v16  ;;  %2630 = vmatpush3.msra.mxu0 %v1232_v25 }
 0x618   : > { %2653 = vmatprep.subr.mxu0 %v2879_v8 }
 0x6a0   : > { %v1207_v17 = vpop.xlane.xlu1 %1206 }
 0x6a1   : > { %v1208_v18 = vmul.f32 0.03125, %v1207_v17 }
 0x6a3   : > { %v1209_v19 = vsub.f32 %v1202_v15, %v1208_v18  ;;  %v2455_v15 = vld [vmem:[%s3441_s15] ss:$0 sm:$0xff]  ;;  %v2461_v18 = vld [vmem:[%s3465_s5 + $0x1] ss:$0 sm:$0xff]  ;;  %s2821_s5 = sshll.u32 %s2886_s4, 4  ;;  %s2822_s5 = int_to_ptr.vmem [resolvable:$false] %s2821_s5 }
 0x6a4   : > { %s2823_s0 = scalar_lea.vmem %s2822_s5, 32 }
 0x6a5   : > { %v1210_v21 = vmul.f32 %v1209_v19, %v1209_v19 }
 0x6a7   : > { %v1211_v22 = vsel %vm587_vm0, %v1210_v21, 0.0 }
 0x6a8   : > { %1212 = vadd.xlane.f32.xlu0 %v1211_v22 }
 0x731   : > { %v1213_v26 = vpop.xlane.xlu0 %1212 }
 0x732   : > { %v1214_v27 = vmul.f32 0.03125, %v1213_v26 }
 0x734   : > { %v1215_v28 = vadd.f32 1e-12, %v1214_v27 }
 0x736   : > { %2795 = vrsqrt.f32 %v1215_v28 }
 0x743   : > { %v2796_v29 = vpop.eup %2795 }
 0x744   : > { %v1217_v31 = vmul.f32 %v2796_v29, %v1209_v19 }
 0x746   : > { %v1224_v33 = vmul.f32 %v2448_v30, %v1217_v31 }
 0x748   : > { %v1231_v35 = vadd.f32 %v2449_v32, %v1224_v33 }
 0x74a   : > { %2632 = vmatmul.mubr.msk.f32.vlgmr.msra.gmra.mxu0 %vm587_vm0, %v1231_v35 }
 0x74b   : > { %2661 = vmatprep.mubr.msk.f32.mxu0 %vm2880_vm1, %v2879_v8  ;;  %2654 = vmatpush3.msra.mxu0 %v2459_v4 }
 0x74c   : > { %2655 = vmatprep.subr.mxu0 %v2879_v8 }
 0x74d   : > { %2656 = vmatpush3.msra.mxu0 %v2458_v5 }
 0x74e   : > { %2657 = vmatprep.subr.mxu0 %v2879_v8 }
 0x74f   : > { %2658 = vmatpush3.msra.mxu0 %v2457_v6 }
 0x750   : > { %2659 = vmatprep.subr.mxu0 %v2879_v8 }
 0x751   : > { %2660 = vmatpush3.msra.mxu0 %v2456_v7 }
 0x752   : > { %2664 = vmatprep.subr.mxu0 %v2879_v8 }
 0x80a   : > { %v1312_v45 = vpop.f32.mrf.mxu0 }
 0x80b   : > { %v1313_v46 = vadd.f32 %v2450_v44, %v1312_v45 }
 0x80c   : > { %v2633_v47 = vpop.f32.mrf.mxu0 }
 0x80d   : > { %v1317_v48 = vmul.f32 0.044715, %v1313_v46  ;;  %v1316_v54 = vmul.f32 0.5, %v1313_v46 }
 0x80f   : > { %v1318_v49 = vmul.f32 %v1317_v48, %v1313_v46 }
 0x811   : > { %v1319_v50 = vmul.f32 %v1318_v49, %v1313_v46 }
 0x813   : > { %v1320_v51 = vadd.f32 %v1319_v50, %v1313_v46 }
 0x815   : > { %v1321_v52 = vmul.f32 0.7978846, %v1320_v51 }
 0x817   : > { %2797 = vtanh.f32 %v1321_v52 }
 0x824   : > { %v2798_v53 = vpop.eup %2797 }
 0x825   : > { %v1323_v55 = vadd.f32 1.0, %v2798_v53  ;;  %v2464_v53 = vld [vmem:[%s3432_s6 + $0x28] sm:$0xff] }
 0x827   : > { %v1324_v56 = vmul.f32 %v1323_v55, %v1316_v54  ;;  %v2463_v54 = vld [vmem:[%s3432_s6 + $0x20] sm:$0xff]  ;;  %v2466_v55 = vld [vmem:[%s3432_s6 + $0x38] sm:$0xff] }
 0x829   : > { %2651 = vmatmul.mubr.msk.f32.vlgmr.msra.gmra.mxu1 %vm1340_vm4, %v1324_v56  ;;  %v2465_v56 = vld [vmem:[%s3432_s6 + $0x30] sm:$0xff] }
 0x82a   : > { %2671 = vmatprep.mubr.msk.f32.mxu1 %vm2880_vm1, %v2879_v8 }
 0x8e9   : > { %v1410_v58 = vpop.f32.mrf.mxu1 }
 0x8ea   : > { %v1411_v59 = vadd.f32 %v2452_v57, %v1410_v58 }
 0x8eb   : > { %v2652_v60 = vpop.f32.mrf.mxu1 }
 0x8ec   : > { %v1414_v61 = vadd.f32 %v1411_v59, %v1231_v35 }
 0x8ee   : > { %v1417_v62 = vsel %vm587_vm0, %v1414_v61, 0.0 }
 0x8ef   : > { %1418 = vadd.xlane.f32.xlu1 %v1417_v62 }
 0x978   : > { %v1419_v63 = vpop.xlane.xlu1 %1418 }
 0x979   : > { %v1420_v0 = vmul.f32 0.03125, %v1419_v63 }
 0x97b   : > { %v1421_v1 = vsub.f32 %v1414_v61, %v1420_v0  ;;  %v2476_v0 = vld [vmem:[%s3433_s7 + $0x1] ss:$0 sm:$0xff] }
 0x97d   : > { %v1422_v2 = vmul.f32 %v1421_v1, %v1421_v1 }
 0x97f   : > { %v1423_v3 = vsel %vm587_vm0, %v1422_v2, 0.0 }
 0x980   : > { %1424 = vadd.xlane.f32.xlu1 %v1423_v3 }
 0xa09   : > { %v1425_v9 = vpop.xlane.xlu1 %1424 }
 0xa0a   : > { %v1426_v10 = vmul.f32 0.03125, %v1425_v9 }
 0xa0c   : > { %v1427_v11 = vadd.f32 1e-12, %v1426_v10 }
 0xa0e   : > { %2799 = vrsqrt.f32 %v1427_v11 }
 0xa1b   : > { %v2800_v12 = vpop.eup %2799 }
 0xa1c   : > { %v1429_v14 = vmul.f32 %v2800_v12, %v1421_v1  ;;  %v2484_v12 = vld [vmem:[%s3436_s10 + $0x38] sm:$0xff] }
 0xa1e   : > { %v1436_v16 = vmul.f32 %v2454_v13, %v1429_v14  ;;  %v2483_v13 = vld [vmem:[%s3436_s10 + $0x30] sm:$0xff]  ;;  %v2482_v14 = vld [vmem:[%s3436_s10 + $0x28] sm:$0xff] }
 0xa20   : > { %v3230_v17 = vadd.f32 %v2455_v15, %v1436_v16  ;;  %v2481_v15 = vld [vmem:[%s3436_s10 + $0x20] sm:$0xff] }
 0xa22   : > { %2662 = vmatmul.mubr.msk.f32.vlgmr.msra.gmra.mxu0 %vm587_vm0, %v3230_v17 }
 0xa23   : > { %2666 = vmatprep.mubr.msk.f32.mxu0 %vm2880_vm1, %v2879_v8 }
 0xae2   : > { %v1526_v19 = vpop.f32.mrf.mxu0 }
 0xae3   : > { %v1527_v21 = vadd.f32 %v2461_v18, %v1526_v19 }
 0xae4   : > { %v2663_v22 = vpop.f32.mrf.mxu0 }
 0xae5   : > { %1703 = vrot.lane.b32.xlu0 %v1527_v21, %s3467_s21  ;;  %1536 = vrot.lane.b32.xlu1 %v1527_v21, %s3468_s24  ;;  %s2366_s21 = sshll.u32 %s576_s25, 4  ;;  %s2367_s21 = int_to_ptr.vmem [resolvable:$true] %s2366_s21 }
 0xae6   : > { %p2824_p0 = scmp.lt.s32.totalorder %s2367_s21, %s2822_s5 }
 0xae9   : > { %1701 = vrot.lane.b32.xlu1 %v1527_v21, %s3469_s19 }
 0xb57   : > { %v1537_v23 = vpop.permute.xlu1 %1536  ;;  %v1704_v24 = vpop.permute.xlu0 %1703 }
 0xb58   : > { %2665 = vmatpush3.xpose.msk.msra.mxu0 %vm710_vm2, %v1537_v23  ;;  %v2480_v23 = vld [vmem:[%s3435_s9 + $0x1] ss:$0 sm:$0xff] }
 0xb59   : > { %2674 = vmatprep.subr.mxu0 %v2879_v8 }
 0xb5b   : > { %2667 = vmatmul.mubr.msk.f32.vlgmr.msra.gmra.mxu0 %vm710_vm2, %v1527_v21  ;;  %v1702_v20 = vpop.permute.xlu1 %1701 }
 0xb5c   : > { %2675 = vmatpush3.xpose.msk.msra.mxu0 %vm710_vm2, %v1704_v24  ;;  %2676 = vmatprep.mubr.msk.f32.mxu0 %vm2880_vm1, %v2879_v8 }
 0xb5d   : > { %2684 = vmatprep.subr.mxu0 %v2879_v8 }
 0xb5f   : > { %2677 = vmatmul.mubr.msk.f32.vlgmr.msra.gmra.mxu0 %vm710_vm2, %v1702_v20 }
 0xb60   : > { %2688 = vmatprep.mubr.msk.f32.mxu0 %vm2880_vm1, %v2879_v8  ;;  %2685 = vmatpush3.msra.mxu0 %v2466_v55 }
 0xb61   : > { %2686 = vmatprep.subr.mxu0 %v2879_v8 }
 0xb62   : > { %2687 = vmatpush3.msra.mxu0 %v2465_v56 }
 0xb63   : > { %2698 = vmatprep.subr.mxu0 %v2879_v8 }
 0xc1b   : > { %v1608_v25 = vpop.f32.mrf.mxu0 }
 0xc1c   : > { %v1612_v26 = vmul.f32 0.25, %v1608_v25  ;;  %v2495_v25 = vld [vmem:[%s3438_s12 + $0x78] sm:$0xff] }
 0xc1d   : > { %v2668_v27 = vpop.f32.mrf.mxu0 }
 0xc1e   : > { %v1613_v28 = vadd.f32 %v1612_v26, %v3094_v34  ;;  %v2494_v26 = vld [vmem:[%s3438_s12 + $0x70] sm:$0xff]  ;;  %v2493_v27 = vld [vmem:[%s3438_s12 + $0x68] sm:$0xff] }
 0xc1f   : > { %v1775_v29 = vpop.f32.mrf.mxu0 }
 0xc20   : > { %v1779_v30 = vmul.f32 0.25, %v1775_v29  ;;  %v1614_v31 = vsel %vm793_vm3, %v1613_v28, -inf  ;;  %v2491_v29 = vld [vmem:[%s3438_s12 + $0x58] sm:$0xff] }
 0xc21   : > { %1615 = vmax.xlane.f32.xlu1 %v1614_v31  ;;  %v2678_v32 = vpop.f32.mrf.mxu0  ;;  %v2489_v31 = vld [vmem:[%s3438_s12 + $0x48] sm:$0xff] }
 0xc22   : > { %v1780_v33 = vadd.f32 %v1779_v30, %v3094_v34  ;;  %v2490_v30 = vld [vmem:[%s3438_s12 + $0x50] sm:$0xff]  ;;  %v2488_v32 = vld [vmem:[%s3438_s12 + $0x40] sm:$0xff] }
 0xc24   : > { %v1781_v35 = vsel %vm793_vm3, %v1780_v33, -inf }
 0xc25   : > { %1782 = vmax.xlane.f32.xlu0 %v1781_v35 }
 0xcaa   : > { %v1616_v36 = vpop.xlane.xlu1 %1615 }
 0xcab   : > { %v1617_v37 = vsub.f32 %v1613_v28, %v1616_v36  ;;  %v2492_v28 = vld [vmem:[%s3438_s12 + $0x60] sm:$0xff] }
 0xcad   : > { %v1618_v38 = vmul.f32 1.442695, %v1617_v37 }
 0xcae   : > { %v1783_v39 = vpop.xlane.xlu0 %1782 }
 0xcaf   : > { %2801 = vpow2.f32 %v1618_v38  ;;  %v1784_v40 = vsub.f32 %v1780_v33, %v1783_v39  ;;  %v2486_v33 = vld [vmem:[%s3437_s11 + $0x1] ss:$0 sm:$0xff] }
 0xcb1   : > { %v1785_v41 = vmul.f32 1.442695, %v1784_v40 }
 0xcb3   : > { %2803 = vpow2.f32 %v1785_v41 }
 0xcbc   : > { %v2802_v42 = vpop.eup %2801 }
 0xcbd   : > { %v1620_v43 = vsel %vm793_vm3, %v2802_v42, 0.0 }
 0xcbe   : > { %1621 = vadd.xlane.f32.xlu0 %v1620_v43 }
 0xcc0   : > { %v2804_v44 = vpop.eup %2803 }
 0xcc1   : > { %v1787_v45 = vsel %vm793_vm3, %v2804_v44, 0.0 }
 0xcc2   : > { %1788 = vadd.xlane.f32.xlu1 %v1787_v45 }
 0xcd3   : > { %1792 = vrot.lane.b32.xlu1 %v1527_v21, %s3470_s22  ;;  %s2354_s22 = scalar_lea.sflag [#allocation3], %s575_s29 }
 0xcd4   : > { %1625 = vrot.lane.b32.xlu0 %v1527_v21, %s3471_s20  ;;  %v2479_v21 = vld [vmem:[%s3434_s8 + $0x1] ss:$0 sm:$0xff]  ;;  %s2817_s20 = scalar_lea.vmem %s2367_s21, 16 }
 0xcd5   : > { %p2818_p11 = scmp.ne.s32.totalorder %s2367_s21, %s2817_s20  ;;  %p2825_p1 = scmp.lt.s32.totalorder %s2823_s0, %s2817_s20 }
 0xcd7   : > { %p2819_p12 = pnand %p2818_p11, %p3020_p5  ;;  %p2826_p2 = por %p2825_p1, %p2824_p0 }
 0xcd9   : > { %p2820_p13 = pneg %p2819_p12 }
 0xcdb   : > { %p2827_p3 = pnand %p2826_p2, %p2820_p13 }
 0xd47   : > { %v1622_v34 = vpop.xlane.xlu0 %1621 }
 0xd48   : > { %2805 = vrcp.f32 %v1622_v34 }
 0xd4b   : > { %v1789_v46 = vpop.xlane.xlu1 %1788  ;;  %v1626_v47 = vpop.permute.xlu0 %1625 }
 0xd4c   : > { %2807 = vrcp.f32 %v1789_v46  ;;  %2670 = vmatpush3.msra.mxu1 %v1626_v47  ;;  %v2497_v46 = vld [vmem:[%s3439_s13 + $0x1] ss:$0 sm:$0xff] }
 0xd4d   : > { %2679 = vmatprep.subr.mxu1 %v2879_v8 }
 0xd4f   : > { %v1793_v50 = vpop.permute.xlu1 %1792 }
 0xd55   : > { %v2806_v48 = vpop.eup %2805 }
 0xd56   : > { %v1624_v49 = vmul.f32 %v2806_v48, %v2802_v42 }
 0xd58   : > { %2672 = vmatmul.mubr.msk.f32.vlgmr.msra.gmra.mxu1 %vm793_vm3, %v1624_v49 }
 0xd59   : > { %v2808_v51 = vpop.eup %2807  ;;  %2680 = vmatpush3.msra.mxu1 %v1793_v50  ;;  %2681 = vmatprep.mubr.msk.f32.mxu1 %vm2880_vm1, %v2879_v8 }
 0xd5a   : > { %v1791_v52 = vmul.f32 %v2808_v51, %v2804_v44  ;;  %2691 = vmatprep.subr.mxu1 %v2879_v8 }
 0xd5c   : > { %2682 = vmatmul.mubr.msk.f32.vlgmr.msra.gmra.mxu1 %vm793_vm3, %v1791_v52 }
 0xd5d   : > { %2692 = vmatpush3.msra.mxu1 %v2464_v53  ;;  %2695 = vmatprep.mubr.msk.f32.mxu1 %vm2880_vm1, %v2879_v8 }
 0xd5e   : > { %2693 = vmatprep.subr.mxu1 %v2879_v8 }
 0xd5f   : > { %2694 = vmatpush3.msra.mxu1 %v2463_v54 }
 0xd60   : > { %2709 = vmatprep.subr.mxu1 %v2879_v8 }
 0xe18   : > { %v1697_v57 = vpop.f32.mrf.mxu1 }
 0xe19   : > { %2696 = vmatmul.mubr.msk.f32.vlgmr.msra.gmra.mxu1 %vm710_vm2, %v1697_v57  ;;  %v2275_v57 = vld [vmem:[%s3442_s16 + $0x18] sm:$0xff] }
 0xe1a   : > { %v2673_v58 = vpop.f32.mrf.mxu1  ;;  %2725 = vmatprep.mubr.msk.f32.mxu1 %vm2880_vm1, %v2879_v8  ;;  %2710 = vmatpush3.msra.mxu1 %v2495_v25 }
 0xe1b   : > { %2711 = vmatprep.subr.mxu1 %v2879_v8  ;;  %v2274_v58 = vld [vmem:[%s3442_s16 + $0x10] sm:$0xff] }
 0xe1c   : > { %v1864_v59 = vpop.f32.mrf.mxu1  ;;  %2712 = vmatpush3.msra.mxu1 %v2494_v26 }
 0xe1d   : > { %2689 = vmatmul.mubr.msk.f32.vlgmr.msra.gmra.mxu0 %vm710_vm2, %v1864_v59  ;;  %2713 = vmatprep.subr.mxu1 %v2879_v8  ;;  %v2273_v59 = vld [vmem:[%s3442_s16 + $0x8] sm:$0xff] }
 0xe1e   : > { %v2683_v60 = vpop.f32.mrf.mxu1  ;;  %2706 = vmatprep.mubr.msk.f32.mxu0 %vm2880_vm1, %v2879_v8  ;;  %2699 = vmatpush3.msra.mxu0 %v2484_v12 }
 0xe1f   : > { %2700 = vmatprep.subr.mxu0 %v2879_v8  ;;  %2714 = vmatpush3.msra.mxu1 %v2493_v27  ;;  %v2272_v60 = vld [vmem:[%s3442_s16] sm:$0xff] }
 0xe20   : > { %2701 = vmatpush3.msra.mxu0 %v2483_v13  ;;  %2715 = vmatprep.subr.mxu1 %v2879_v8 }
 0xe21   : > { %2702 = vmatprep.subr.mxu0 %v2879_v8  ;;  %2716 = vmatpush3.msra.mxu1 %v2492_v28 }
 0xe22   : > { %2703 = vmatpush3.msra.mxu0 %v2482_v14  ;;  %2717 = vmatprep.subr.mxu1 %v2879_v8 }
 0xe23   : > { %2704 = vmatprep.subr.mxu0 %v2879_v8  ;;  %2718 = vmatpush3.msra.mxu1 %v2491_v29 }
 0xe24   : > { %2705 = vmatpush3.msra.mxu0 %v2481_v15  ;;  %2719 = vmatprep.subr.mxu1 %v2879_v8 }
 0xe25   : > { %2728 = vmatprep.subr.mxu0 %v2879_v8  ;;  %2720 = vmatpush3.msra.mxu1 %v2490_v30 }
 0xe26   : > { %2721 = vmatprep.subr.mxu1 %v2879_v8 }
 0xe27   : > { %2722 = vmatpush3.msra.mxu1 %v2489_v31 }
 0xe28   : > { %2723 = vmatprep.subr.mxu1 %v2879_v8 }
 0xe29   : > { %2724 = vmatpush3.msra.mxu1 %v2488_v32 }
 0xed9   : > { %v2010_v61 = vpop.f32.mrf.mxu1 }
 0xedb   : > { %v2697_v62 = vpop.f32.mrf.mxu1 }
 0xedd   : > { %v1937_v63 = vpop.f32.mrf.mxu0 }
 0xede   : > { %v2011_v1 = vadd.f32 %v2010_v61, %v1937_v63 }
 0xedf   : > { %v2690_v2 = vpop.f32.mrf.mxu0 }
 0xee0   : > { %v2022_v3 = vadd.f32 %v2476_v0, %v2011_v1  ;;  %v2501_v1 = vld [vmem:[%s3440_s14 + $0x1] ss:$0 sm:$0xff] }
 0xee2   : > { %v2023_v4 = vadd.f32 %v2022_v3, %v3230_v17  ;;  %v2502_v3 = vld [vmem:[%s3441_s15 + $0x1] ss:$0 sm:$0xff] }
 0xee4   : > { %v2028_v5 = vsel %vm587_vm0, %v2023_v4, 0.0 }
 0xee5   : > { %2029 = vadd.xlane.f32.xlu1 %v2028_v5 }
 0xf6e   : > { %v2030_v6 = vpop.xlane.xlu1 %2029 }
 0xf6f   : > { %v2031_v7 = vmul.f32 0.03125, %v2030_v6 }
 0xf71   : > { %v2032_v9 = vsub.f32 %v2023_v4, %v2031_v7 }
 0xf73   : > { %v2033_v10 = vmul.f32 %v2032_v9, %v2032_v9 }
 0xf75   : > { %v2034_v11 = vsel %vm587_vm0, %v2033_v10, 0.0 }
 0xf76   : > { %2035 = vadd.xlane.f32.xlu0 %v2034_v11 }
 0xfff   : > { %v2036_v16 = vpop.xlane.xlu0 %2035 }
0x1000   : > { %v2037_v17 = vmul.f32 0.03125, %v2036_v16 }
0x1002   : > { %v2038_v18 = vadd.f32 1e-12, %v2037_v17 }
0x1004   : > { %2809 = vrsqrt.f32 %v2038_v18 }
0x1011   : > { %v2810_v19 = vpop.eup %2809 }
0x1012   : > { %v2040_v22 = vmul.f32 %v2810_v19, %v2032_v9 }
0x1014   : > { %v2047_v24 = vmul.f32 %v2479_v21, %v2040_v22 }
0x1016   : > { %v2054_v20 = vadd.f32 %v2480_v23, %v2047_v24 }
0x1018   : > { %2707 = vmatmul.mubr.msk.f32.vlgmr.msra.gmra.mxu0 %vm587_vm0, %v2054_v20 }
0x1019   : > { %2736 = vmatprep.mubr.msk.f32.mxu0 %vm2880_vm1, %v2879_v8  ;;  %2729 = vmatpush3.msra.mxu0 %v2275_v57 }
0x101a   : > { %2730 = vmatprep.subr.mxu0 %v2879_v8 }
0x101b   : > { %2731 = vmatpush3.msra.mxu0 %v2274_v58 }
0x101c   : > { %2732 = vmatprep.subr.mxu0 %v2879_v8 }
0x101d   : > { %2733 = vmatpush3.msra.mxu0 %v2273_v59 }
0x101e   : > { %2734 = vmatprep.subr.mxu0 %v2879_v8  ;;  %v2276_v8 = vld [vmem:[%s3443_s17] sm:$0x1] }
0x101f   : > { %2735 = vmatpush3.msra.mxu0 %v2272_v60 }
0x10d8   : > { %v2137_v35 = vpop.f32.mrf.mxu0 }
0x10d9   : > { %v2138_v36 = vadd.f32 %v2486_v33, %v2137_v35 }
0x10da   : > { %v2708_v37 = vpop.f32.mrf.mxu0 }
0x10db   : > { %v2142_v38 = vmul.f32 0.044715, %v2138_v36  ;;  %v2141_v44 = vmul.f32 0.5, %v2138_v36 }
0x10dd   : > { %v2143_v39 = vmul.f32 %v2142_v38, %v2138_v36 }
0x10df   : > { %v2144_v40 = vmul.f32 %v2143_v39, %v2138_v36 }
0x10e1   : > { %v2145_v41 = vadd.f32 %v2144_v40, %v2138_v36 }
0x10e3   : > { %v2146_v42 = vmul.f32 0.7978846, %v2145_v41 }
0x10e5   : > { %2811 = vtanh.f32 %v2146_v42 }
0x10f2   : > { %v2812_v43 = vpop.eup %2811 }
0x10f3   : > { %v2148_v45 = vadd.f32 1.0, %v2812_v43 }
0x10f5   : > { %v2149_v34 = vmul.f32 %v2148_v45, %v2141_v44 }
0x10f7   : > { %2726 = vmatmul.mubr.msk.f32.vlgmr.msra.gmra.mxu1 %vm1340_vm4, %v2149_v34 }
0x11b7   : > { %v2236_v47 = vpop.f32.mrf.mxu1 }
0x11b8   : > { %v2237_v48 = vadd.f32 %v2497_v46, %v2236_v47 }
0x11b9   : > { %v2727_v49 = vpop.f32.mrf.mxu1 }
0x11ba   : > { %v2240_v50 = vadd.f32 %v2237_v48, %v2054_v20 }
0x11bc   : > { %v2245_v51 = vsel %vm587_vm0, %v2240_v50, 0.0 }
0x11bd   : > { %2246 = vadd.xlane.f32.xlu0 %v2245_v51 }
0x1246   : > { %v2247_v52 = vpop.xlane.xlu0 %2246 }
0x1247   : > { %v2248_v53 = vmul.f32 0.03125, %v2247_v52 }
0x1249   : > { %v2249_v54 = vsub.f32 %v2240_v50, %v2248_v53 }
0x124b   : > { %v2250_v55 = vmul.f32 %v2249_v54, %v2249_v54 }
0x124d   : > { %v2251_v56 = vsel %vm587_vm0, %v2250_v55, 0.0 }
0x124e   : > { %2252 = vadd.xlane.f32.xlu1 %v2251_v56 }
0x12d7   : > { %v2253_v61 = vpop.xlane.xlu1 %2252 }
0x12d8   : > { %v2254_v62 = vmul.f32 0.03125, %v2253_v61 }
0x12da   : > { %v2255_v63 = vadd.f32 1e-12, %v2254_v62 }
0x12dc   : > { %2813 = vrsqrt.f32 %v2255_v63 }
0x12e9   : > { %v2814_v0 = vpop.eup %2813 }
0x12ea   : > { %v2257_v2 = vmul.f32 %v2814_v0, %v2249_v54 }
0x12ec   : > { %v2264_v4 = vmul.f32 %v2501_v1, %v2257_v2 }
0x12ee   : > { %v2271_v5 = vadd.f32 %v2502_v3, %v2264_v4 }
0x12f0   : > { %2737 = vmatmul.mubr.msk.f32.vlgmr.msra.gmra.mxu0 %vm587_vm0, %v2271_v5 }
0x13b0   : > { %v2346_v6 = vpop.f32.mrf.mxu0 }
0x13b1   : > { %v2347_v7 = vadd.f32 %v2346_v6, %v2276_v8 }
0x13b2   : > { %v2738_v9 = vpop.f32.mrf.mxu0 }
0x13b3   : > { %2815 = vtanh.f32 %v2347_v7 }
0x13c0   : > { %v2816_v10 = vpop.eup %2815 }
0x13c1   : > { %2352 = vst.msk [vmem:[%s576_s25] sm:$0x1] %vm2351_vm5, %v2816_v10 }
0x13c2   : > { %2830 = shalt.err (!%p2827_p3)
}
0x13c3   : > { %s2831_s26 = scalar_lea.hbm %s3391_s3, 16  ;;  %s2835_s4 = scalar_lea.hbm %s3444_s18, 32 }
0x13c4   : > { %p2832_p4 = scmp.ne.s32.totalorder %s3391_s3, %s2831_s26  ;;  %p2836_p9 = scmp.lt.s32.totalorder %s3391_s3, %s3444_s18 }
0x13c5   : > { %p2837_p10 = scmp.lt.s32.totalorder %s2835_s4, %s2831_s26 }
0x13c6   : > { %p2833_p7 = pnand %p2832_p4, %p3020_p5 }
0x13c7   : > { %p2838_p11 = por %p2837_p10, %p2836_p9 }
0x13c8   : > { %p2834_p8 = pneg %p2833_p7 }
0x13ca   : > { %p2839_p12 = pnand %p2838_p11, %p2834_p8 }
0x13cc   : > { %2842 = shalt.err (!%p2839_p12)
}
0x13cd   : > { %2739 = dma.vmem_to_hbm [thread:$0]  (%p3020_p5), %s2367_s21, 16, %s3391_s3, %s2354_s22  }
0x13ce PF: > { %p2745_p13 = scmp.ge.s32.totalorder %s2877_s30, 2  ;;  %s2378_s5 = sand.u32 1, %s2865_s27  }
0x13cf   : > { %s2379_s20 = scalar_lea.sflag [#allocation3], %s2378_s5 }
0x13d0   : > { %p2742_p0 = pnand %p2745_p13, %p3024_p6 }
0x13d2   : > { %p2743_p1 = pneg %p2742_p0 }
0x13d4   : > { %2860 = dma.done.wait (%p2743_p1), %s2379_s20, 16  }
0x13d5   : > { %2862 = vsyncadd (%p2743_p1), %s2379_s20, 4294967280  ;;  %s3472_s0 = sld [smem:[#allocation5_spill]]  ;;  %p28_p2 = scmp.ge.s32.totalorder %s3007_s1, 4  }
0x13d6   : > { %s3473_s29 = sld [smem:[#allocation6_spill]]  ;;  %s3474_s27 = smov %s2869_s28 }
0x13d7   : > { %s3476_s30 = smov %s3007_s1  ;;  %30 = sbr.rel (!%p28_p2) target bundleno = 10 (0xa), region = 142 }
0x13db   : > { %s3475_s28 = smov %s3472_s0 }
0x13dc   :  { %2383 = vsyncpa [#allocation3], 1 }
0x13dd   :  { %2385 = vsyncpa [#allocation3 + $0x1], 1 }

</bundles_post_ra>
